<compile_context>
chip_gen: v6e
topology: v6e:2x2x1
jax: 0.10.0
libtpu: 0.0.40
codegen_flags: <defaults>
</compile_context>

<pallas_src>
import math

import jax
import jax.numpy as jnp
from jax.experimental import pallas as pl
from jax.experimental.pallas import tpu as pltpu

# ----------------- small synthetic config (MiniLM-like, scaled down) -----------------
B, S, H = 2, 8, 32          # batch, seq, hidden
NH, HD = 4, 8               # heads, head dim (NH * HD == H)
I = 64                      # FFN intermediate size
L = 2                       # encoder layers
VOCAB = 100
TYPE_VOCAB = 2
MAX_POS = 16
NUM_CLASSES = 3
CPAD = 128                  # lane-padded classifier width
LN_EPS = 1e-12              # BERT LayerNorm eps
SN = NH * S                 # head-stacked token axis (per sample)
NEG_INF = -1e9

assert S & (S - 1) == 0, "S must be a power of two for the shift-based head-id"
LOG2_S = S.bit_length() - 1


# ----------------- in-kernel math helpers -----------------
def _layernorm(x, gamma, beta):
    mean = jnp.mean(x, axis=-1, keepdims=True)
    var = jnp.mean((x - mean) ** 2, axis=-1, keepdims=True)
    return (x - mean) * jax.lax.rsqrt(var + LN_EPS) * gamma + beta


def _gelu(x):
    # TODO(synk): HF BERT uses exact erf-GELU; tanh approximation used since erf
    # lowering inside Mosaic is not guaranteed.
    c = math.sqrt(2.0 / math.pi)
    return 0.5 * x * (1.0 + jnp.tanh(c * (x + 0.044715 * x * x * x)))


# ----------------- fused Pallas kernel: whole forward pass (one sample / grid step) ----
def fused_forward_kernel(emb_ref, kmask_ref, embln_ref,
                         wqkv_ref, bqkv_ref, wo_ref, wi_ref, wf_ref,
                         vech_ref, bi_ref,
                         wp_ref, bp_ref, wc_ref, bc_ref,
                         o_ref):
    """One grid step == one batch sample (grid=(B,), "parallel").

       emb:   [S, H]      f32  summed word+pos+type embeddings of this sample
       kmask: [8, SN]     f32  per-key additive mask (0 / -1e9), head-tiled, rows equal
       embln: [2, H]      f32  rows: emb-LN gamma, beta
       wqkv:  [L, H, 3H]  bf16 Q|K|V weights (Q columns pre-scaled by 1/sqrt(HD))
       bqkv:  [L, 1, 3H]  f32
       wo:    [L, H, H]   bf16
       wi/wf: [L, H, I] / [L, I, H]  bf16
       vech:  [L, 8, H]   f32  rows 0..5: bo, ln1_g, ln1_b, bf, ln2_g, ln2_b (6,7 pad)
       bi:    [L, 1, I]   f32
       wp/bp: [H, H] bf16 / [1, H] f32          pooler dense
       wc/bc: [H, CPAD] bf16 / [1, CPAD] f32    classifier (lane-padded)
       o:     [8, CPAD]   f32  lane-dense logits slab (row 0 is the real output)"""

    # embedding LayerNorm
    x0 = _layernorm(emb_ref[...], embln_ref[0:1, :], embln_ref[1:2, :])        # [S, H]

    # Head-block-diagonal additive mask, built in-kernel once (hoisted out of the
    # unrolled layer loop).  Stacked row/col index r = h*S + i  (head h, token i).
    row_head = jax.lax.shift_right_logical(
        jax.lax.broadcasted_iota(jnp.int32, (SN, SN), 0), LOG2_S)
    col_head = jax.lax.shift_right_logical(
        jax.lax.broadcasted_iota(jnp.int32, (SN, SN), 1), LOG2_S)
    attn_mask = jnp.where(row_head == col_head, kmask_ref[0:1, :], NEG_INF)    # [SN, SN]

    def layer_body(l, x):
        wqkv = wqkv_ref[l]                      # [H, 3H] bf16
        bqkv = bqkv_ref[l]                      # [1, 3H] f32
        wo = wo_ref[l]                          # [H, H]  bf16
        wi = wi_ref[l]                          # [H, I]  bf16
        wf = wf_ref[l]                          # [I, H]  bf16
        vech = vech_ref[l]                      # [8, H]  f32
        bi = bi_ref[l]                          # [1, I]  f32
        bo, g1, be1 = vech[0:1, :], vech[1:2, :], vech[2:3, :]
        bff, g2, be2 = vech[3:4, :], vech[4:5, :], vech[5:6, :]

        # fused Q|K|V projection: one lane-dense 2-D matmul (bf16 MXU, f32 accumulate)
        qkv = jnp.dot(x.astype(jnp.bfloat16), wqkv,
                      preferred_element_type=jnp.float32) + bqkv               # [S, 3H]

        # head-stack onto the sublane axis: row h*S + i holds (head h, token i)
        q = jnp.concatenate([qkv[:, h * HD:(h + 1) * HD]
                             for h in range(NH)], axis=0)                       # [SN, HD]
        k = jnp.concatenate([qkv[:, H + h * HD:H + (h + 1) * HD]
                             for h in range(NH)], axis=0)
        v = jnp.concatenate([qkv[:, 2 * H + h * HD:2 * H + (h + 1) * HD]
                             for h in range(NH)], axis=0)

        # one score matmul over all heads (softmax scale already folded into Q weights)
        scores = jax.lax.dot_general(q, k, (((1,), (1,)), ((), ())),
                                     preferred_element_type=jnp.float32) + attn_mask
        scores = scores - jnp.max(scores, axis=-1, keepdims=True)
        probs = jnp.exp(scores)                              # cross-head entries -> exactly 0
        probs = probs * pl.reciprocal(jnp.sum(probs, axis=-1, keepdims=True), approx=True)
        ctx = jnp.dot(probs, v, preferred_element_type=jnp.float32)             # [SN, HD]

        # un-stack heads back onto lanes and apply ONE output projection
        ctx = jnp.concatenate([ctx[h * S:(h + 1) * S, :]
                               for h in range(NH)], axis=1)                      # [S, H]
        attn = jnp.dot(ctx.astype(jnp.bfloat16), wo,
                       preferred_element_type=jnp.float32) + bo                  # [S, H]

        h1 = _layernorm(attn + x, g1, be1)
        ffh = _gelu(jnp.dot(h1.astype(jnp.bfloat16), wi,
                            preferred_element_type=jnp.float32) + bi)            # [S, I]
        ff = jnp.dot(ffh.astype(jnp.bfloat16), wf,
                     preferred_element_type=jnp.float32) + bff                   # [S, H]
        return _layernorm(ff + h1, g2, be2)

    x = jax.lax.fori_loop(0, L, layer_body, x0, unroll=True)

    # pooler + classifier on the CLS row (token 0 of this sample), x still VMEM-resident
    cls = x[0:1, :]                                                              # [1, H]
    pooled = jnp.tanh(jnp.dot(cls.astype(jnp.bfloat16), wp_ref[...],
                              preferred_element_type=jnp.float32) + bp_ref[...])
    logits = jnp.dot(pooled.astype(jnp.bfloat16), wc_ref[...],
                     preferred_element_type=jnp.float32) + bc_ref[...]           # [1, CPAD]
    o_ref[...] = jnp.broadcast_to(logits, (8, CPAD))


# ----------------- parameter init (deterministic, synthetic) -----------------
def init_params(key):
    def dense(k, shape):
        return (jax.random.normal(k, shape, jnp.float32) * 0.02).astype(jnp.float32)

    keys = jax.random.split(key, 8 + L)
    params = {
        "word_emb": dense(keys[0], (VOCAB, H)),
        "pos_emb": dense(keys[1], (MAX_POS, H)),
        "type_emb": dense(keys[2], (TYPE_VOCAB, H)),
        "emb_ln_g": jnp.ones((H,), jnp.float32),
        "emb_ln_b": jnp.zeros((H,), jnp.float32),
        "wp": dense(keys[3], (H, H)),
        "bp": jnp.zeros((1, H), jnp.float32),
        "wc": dense(keys[4], (H, NUM_CLASSES)),
        "bc": jnp.zeros((NUM_CLASSES,), jnp.float32),
        "layers": [],
    }
    for li in range(L):
        lk = jax.random.split(keys[8 + li], 6)
        params["layers"].append({
            "wq": dense(lk[0], (H, H)), "bq": jnp.zeros((H,), jnp.float32),
            "wk": dense(lk[1], (H, H)), "bk": jnp.zeros((H,), jnp.float32),
            "wv": dense(lk[2], (H, H)), "bv": jnp.zeros((H,), jnp.float32),
            "wo": dense(lk[3], (H, H)), "bo": jnp.zeros((H,), jnp.float32),
            "g1": jnp.ones((H,), jnp.float32), "be1": jnp.zeros((H,), jnp.float32),
            "wi": dense(lk[4], (H, I)), "bi": jnp.zeros((I,), jnp.float32),
            "wf": dense(lk[5], (I, H)), "bf": jnp.zeros((H,), jnp.float32),
            "g2": jnp.ones((H,), jnp.float32), "be2": jnp.zeros((H,), jnp.float32),
        })
    return params


def pack_params(p):
    """Repack PyTorch-style weights into the fused / stacked kernel layout."""
    scale = 1.0 / math.sqrt(HD)                       # folded softmax scale
    wqkv_l, bqkv_l, wo_l, wi_l, wf_l, vec_l, bi_l = [], [], [], [], [], [], []
    for lyr in p["layers"]:
        wqkv_l.append(jnp.concatenate([lyr["wq"] * scale, lyr["wk"], lyr["wv"]], axis=1))
        bqkv_l.append(jnp.concatenate([lyr["bq"] * scale, lyr["bk"], lyr["bv"]])[None, :])
        wo_l.append(lyr["wo"])
        wi_l.append(lyr["wi"])
        wf_l.append(lyr["wf"])
        vec = jnp.stack([lyr["bo"], lyr["g1"], lyr["be1"],
                         lyr["bf"], lyr["g2"], lyr["be2"]], axis=0)              # [6, H]
        vec_l.append(jnp.concatenate([vec, jnp.zeros((2, H), jnp.float32)], axis=0))
        bi_l.append(lyr["bi"][None, :])

    wc_pad = jnp.zeros((H, CPAD), jnp.float32).at[:, :NUM_CLASSES].set(p["wc"])
    bc_pad = jnp.zeros((1, CPAD), jnp.float32).at[0, :NUM_CLASSES].set(p["bc"])

    bf16 = jnp.bfloat16
    return {
        "word_emb": p["word_emb"], "pos_emb": p["pos_emb"], "type_emb": p["type_emb"],
        "emb_ln": jnp.stack([p["emb_ln_g"], p["emb_ln_b"]], axis=0),             # [2, H]
        "wqkv": jnp.stack(wqkv_l).astype(bf16),                                  # [L, H, 3H]
        "bqkv": jnp.stack(bqkv_l),                                               # [L, 1, 3H]
        "wo": jnp.stack(wo_l).astype(bf16),                                      # [L, H, H]
        "wi": jnp.stack(wi_l).astype(bf16),                                      # [L, H, I]
        "wf": jnp.stack(wf_l).astype(bf16),                                      # [L, I, H]
        "vec_h": jnp.stack(vec_l),                                               # [L, 8, H]
        "bi": jnp.stack(bi_l),                                                   # [L, 1, I]
        "wp": p["wp"].astype(bf16), "bp": p["bp"],
        "wc_pad": wc_pad.astype(bf16), "bc_pad": bc_pad,
    }


def _full_spec(a):
    """Whole-array block (replicated across the batch grid)."""
    zeros = (0,) * a.ndim
    return pl.BlockSpec(a.shape, lambda b, _z=zeros: _z)


# ----------------- full forward: JAX glue (gathers) + one fused batch-parallel kernel --
def forward(packed, input_ids, attention_mask, token_type_ids):
    # embeddings (gathers are plain-JAX glue)
    pos_ids = jnp.arange(S)
    emb = (packed["word_emb"][input_ids]
           + packed["pos_emb"][pos_ids][None, :, :]
           + packed["type_emb"][token_type_ids]).astype(jnp.float32)
    emb = emb.reshape(B * S, H)                                                  # [B*S, H]

    # O(S) per-key additive mask, head-tiled for the stacked layout (lane c = h*S + j
    # -> key j), duplicated to 8 sublanes so the block meets the (8,128) rule.
    key_add = jnp.where(attention_mask > 0, 0.0, NEG_INF).astype(jnp.float32)    # [B, S]
    key_add = jnp.tile(key_add, (1, NH))                                         # [B, SN]
    key_add = jnp.broadcast_to(key_add[:, None, :], (B, 8, SN)).reshape(B * 8, SN)

    args = (emb, key_add, packed["emb_ln"],
            packed["wqkv"], packed["bqkv"], packed["wo"],
            packed["wi"], packed["wf"], packed["vec_h"], packed["bi"],
            packed["wp"], packed["bp"], packed["wc_pad"], packed["bc_pad"])

    in_specs = [
        pl.BlockSpec((S, H), lambda b: (b, 0)),      # this sample's tokens
        pl.BlockSpec((8, SN), lambda b: (b, 0)),     # this sample's key mask
    ] + [_full_spec(a) for a in args[2:]]            # weights: whole-array, grid-invariant

    out = pl.pallas_call(
        fused_forward_kernel,
        out_shape=jax.ShapeDtypeStruct((B * 8, CPAD), jnp.float32),
        grid=(B,),
        in_specs=in_specs,
        out_specs=pl.BlockSpec((8, CPAD), lambda b: (b, 0)),
        compiler_params=pltpu.CompilerParams(dimension_semantics=("parallel",)),
    )(*args)
    return out.reshape(B, 8, CPAD)[:, 0, :NUM_CLASSES]


# ----------------- pure-JAX f32 reference (same tanh-GELU) -----------------
def forward_reference(p, input_ids, attention_mask, token_type_ids):
    def ln(x, g, b):
        m = jnp.mean(x, axis=-1, keepdims=True)
        v = jnp.mean((x - m) ** 2, axis=-1, keepdims=True)
        return (x - m) * jax.lax.rsqrt(v + LN_EPS) * g + b

    pos_ids = jnp.arange(S)
    x = (p["word_emb"][input_ids] + p["pos_emb"][pos_ids][None]
         + p["type_emb"][token_type_ids]).astype(jnp.float32)                    # [B, S, H]
    x = ln(x, p["emb_ln_g"], p["emb_ln_b"])
    add_mask = jnp.where(attention_mask[:, None, None, :] > 0, 0.0, NEG_INF)     # [B,1,1,S]
    for lyr in p["layers"]:
        def heads(w, b):
            y = x @ w + b
            return y.reshape(B, S, NH, HD).transpose(0, 2, 1, 3)                 # [B,NH,S,HD]
        q, k, v = heads(lyr["wq"], lyr["bq"]), heads(lyr["wk"], lyr["bk"]), heads(lyr["wv"], lyr["bv"])
        scores = jnp.einsum("bhqd,bhkd->bhqk", q, k) / math.sqrt(HD) + add_mask
        probs = jax.nn.softmax(scores, axis=-1)
        ctx = jnp.einsum("bhqk,bhkd->bhqd", probs, v).transpose(0, 2, 1, 3).reshape(B, S, H)
        attn = ctx @ lyr["wo"] + lyr["bo"]
        x = ln(attn + x, lyr["g1"], lyr["be1"])
        ff = _gelu(x @ lyr["wi"] + lyr["bi"]) @ lyr["wf"] + lyr["bf"]
        x = ln(ff + x, lyr["g2"], lyr["be2"])
    pooled = jnp.tanh(x[:, 0, :] @ p["wp"] + p["bp"])
    return pooled @ p["wc"] + p["bc"]


if __name__ == "__main__":
    key = jax.random.PRNGKey(0)
    pkey, ikey = jax.random.split(key)
    params = init_params(pkey)
    packed = pack_params(params)

    input_ids = jax.random.randint(ikey, (B, S), 0, VOCAB, dtype=jnp.int32)
    attention_mask = jnp.ones((B, S), jnp.int32).at[1, S - 2:].set(0)   # pad tail of sample 1
    token_type_ids = jnp.zeros((B, S), jnp.int32)

    logits = jax.jit(forward)(packed, input_ids, attention_mask, token_type_ids)
    logits = jax.block_until_ready(logits)

    assert logits.shape == (B, NUM_CLASSES) and logits.dtype == jnp.float32
    assert bool(jnp.all(jnp.isfinite(logits)))

    # bf16 weights + approx-reciprocal softmax give only ~1e-4-level logit deviation
    # at these magnitudes, well inside this tolerance.
    ref = forward_reference(params, input_ids, attention_mask, token_type_ids)
    assert bool(jnp.allclose(logits, ref, atol=5e-3, rtol=5e-2))

    print("KERNEL_OK")
</pallas_src>

<mosaic_0001>
module attributes {stable_mosaic.version = 11 : i64} {
  func.func @fused_forward_kernel(%arg0: i32, %arg1: memref<8x32xf32, #tpu.memory_space<vmem>>, %arg2: memref<8x32xf32, #tpu.memory_space<vmem>>, %arg3: memref<2x32xf32, #tpu.memory_space<vmem>>, %arg4: memref<2x32x96xbf16, #tpu.memory_space<vmem>>, %arg5: memref<2x1x96xf32, #tpu.memory_space<vmem>>, %arg6: memref<2x32x32xbf16, #tpu.memory_space<vmem>>, %arg7: memref<2x32x64xbf16, #tpu.memory_space<vmem>>, %arg8: memref<2x64x32xbf16, #tpu.memory_space<vmem>>, %arg9: memref<2x8x32xf32, #tpu.memory_space<vmem>>, %arg10: memref<2x1x64xf32, #tpu.memory_space<vmem>>, %arg11: memref<32x32xbf16, #tpu.memory_space<vmem>>, %arg12: memref<1x32xf32, #tpu.memory_space<vmem>>, %arg13: memref<32x128xbf16, #tpu.memory_space<vmem>>, %arg14: memref<1x128xf32, #tpu.memory_space<vmem>>, %arg15: memref<8x128xf32, #tpu.memory_space<vmem>>) attributes {dimension_semantics = [#tpu.dimension_semantics<parallel>], iteration_bounds = array<i64: 2>, scalar_prefetch = 0 : i64, scratch_operands = 0 : i64, tpu.core_type = #tpu.core_type<tc>, window_params = [{transform_indices = @transform_0, window_bounds = array<i64: 8, 32>}, {transform_indices = @transform_1, window_bounds = array<i64: 8, 32>}, {pipeline_mode = #tpu.pipeline_mode<synchronous>, transform_indices = @transform_2, window_bounds = array<i64: 2, 32>}, {pipeline_mode = #tpu.pipeline_mode<synchronous>, transform_indices = @transform_3, window_bounds = array<i64: 2, 32, 96>}, {pipeline_mode = #tpu.pipeline_mode<synchronous>, transform_indices = @transform_4, window_bounds = array<i64: 2, 1, 96>}, {pipeline_mode = #tpu.pipeline_mode<synchronous>, transform_indices = @transform_5, window_bounds = array<i64: 2, 32, 32>}, {pipeline_mode = #tpu.pipeline_mode<synchronous>, transform_indices = @transform_6, window_bounds = array<i64: 2, 32, 64>}, {pipeline_mode = #tpu.pipeline_mode<synchronous>, transform_indices = @transform_7, window_bounds = array<i64: 2, 64, 32>}, {pipeline_mode = #tpu.pipeline_mode<synchronous>, transform_indices = @transform_8, window_bounds = array<i64: 2, 8, 32>}, {pipeline_mode = #tpu.pipeline_mode<synchronous>, transform_indices = @transform_9, window_bounds = array<i64: 2, 1, 64>}, {pipeline_mode = #tpu.pipeline_mode<synchronous>, transform_indices = @transform_10, window_bounds = array<i64: 32, 32>}, {pipeline_mode = #tpu.pipeline_mode<synchronous>, transform_indices = @transform_11, window_bounds = array<i64: 1, 32>}, {pipeline_mode = #tpu.pipeline_mode<synchronous>, transform_indices = @transform_12, window_bounds = array<i64: 32, 128>}, {pipeline_mode = #tpu.pipeline_mode<synchronous>, transform_indices = @transform_13, window_bounds = array<i64: 1, 128>}, {transform_indices = @transform_14, window_bounds = array<i64: 8, 128>}]} {
    %c0 = arith.constant 0 : index
    %c0_0 = arith.constant 0 : index
    %0 = vector.load %arg1[%c0, %c0_0] : memref<8x32xf32, #tpu.memory_space<vmem>>, vector<8x32xf32>
    %c0_1 = arith.constant 0 : index
    %c0_2 = arith.constant 0 : index
    %1 = vector.load %arg3[%c0_1, %c0_2] : memref<2x32xf32, #tpu.memory_space<vmem>>, vector<1x32xf32>
    %c1 = arith.constant 1 : index
    %c0_3 = arith.constant 0 : index
    %2 = vector.load %arg3[%c1, %c0_3] : memref<2x32xf32, #tpu.memory_space<vmem>>, vector<1x32xf32>
    %cst = arith.constant dense<0.000000e+00> : vector<8xf32>
    %3 = vector.multi_reduction <add>, %0, %cst [1] : vector<8x32xf32> to vector<8xf32>
    %4 = vector.shape_cast %3 : vector<8xf32> to vector<8x1xf32>
    %cst_4 = arith.constant 3.200000e+01 : f32
    %5 = vector.broadcast %cst_4 : f32 to vector<8x1xf32>
    %6 = arith.divf %4, %5 : vector<8x1xf32>
    %7 = vector.broadcast %6 : vector<8x1xf32> to vector<8x32xf32>
    %8 = arith.subf %0, %7 : vector<8x32xf32>
    %9 = arith.mulf %8, %8 : vector<8x32xf32>
    %cst_5 = arith.constant dense<0.000000e+00> : vector<8xf32>
    %10 = vector.multi_reduction <add>, %9, %cst_5 [1] : vector<8x32xf32> to vector<8xf32>
    %11 = vector.shape_cast %10 : vector<8xf32> to vector<8x1xf32>
    %cst_6 = arith.constant 3.200000e+01 : f32
    %12 = vector.broadcast %cst_6 : f32 to vector<8x1xf32>
    %13 = arith.divf %11, %12 : vector<8x1xf32>
    %14 = vector.broadcast %6 : vector<8x1xf32> to vector<8x32xf32>
    %15 = arith.subf %0, %14 : vector<8x32xf32>
    %cst_7 = arith.constant 9.99999996E-13 : f32
    %16 = vector.broadcast %cst_7 : f32 to vector<8x1xf32>
    %17 = arith.addf %13, %16 : vector<8x1xf32>
    %18 = math.rsqrt %17 : vector<8x1xf32>
    %19 = vector.broadcast %18 : vector<8x1xf32> to vector<8x32xf32>
    %20 = arith.mulf %15, %19 : vector<8x32xf32>
    %21 = vector.broadcast %1 : vector<1x32xf32> to vector<8x32xf32>
    %22 = arith.mulf %20, %21 : vector<8x32xf32>
    %23 = vector.broadcast %2 : vector<1x32xf32> to vector<8x32xf32>
    %24 = arith.addf %22, %23 : vector<8x32xf32>
    %25 = tpu.iota {dimensions = array<i32: 0>} : vector<32x32xi32>
    %c3_i32 = arith.constant 3 : i32
    %26 = vector.broadcast %c3_i32 : i32 to vector<32x32xi32>
    %27 = arith.shrui %25, %26 : vector<32x32xi32>
    %28 = tpu.iota {dimensions = array<i32: 1>} : vector<32x32xi32>
    %c3_i32_8 = arith.constant 3 : i32
    %29 = vector.broadcast %c3_i32_8 : i32 to vector<32x32xi32>
    %30 = arith.shrui %28, %29 : vector<32x32xi32>
    %31 = arith.cmpi eq, %27, %30 : vector<32x32xi32>
    %c0_9 = arith.constant 0 : index
    %c0_10 = arith.constant 0 : index
    %32 = vector.load %arg2[%c0_9, %c0_10] : memref<8x32xf32, #tpu.memory_space<vmem>>, vector<1x32xf32>
    %cst_11 = arith.constant -1.000000e+09 : f32
    %33 = vector.shape_cast %32 : vector<1x32xf32> to vector<1x32xf32>
    %34 = vector.broadcast %33 : vector<1x32xf32> to vector<32x32xf32>
    %35 = vector.broadcast %cst_11 : f32 to vector<32x32xf32>
    %36 = arith.select %31, %34, %35 : vector<32x32xi1>, vector<32x32xf32>
    %c0_i32 = arith.constant 0 : i32
    %37 = arith.index_cast %c0_i32 : i32 to index
    %c0_12 = arith.constant 0 : index
    %c0_13 = arith.constant 0 : index
    %38 = vector.load %arg4[%37, %c0_12, %c0_13] : memref<2x32x96xbf16, #tpu.memory_space<vmem>>, vector<1x32x96xbf16>
    %39 = vector.shape_cast %38 : vector<1x32x96xbf16> to vector<32x96xbf16>
    %40 = arith.index_cast %c0_i32 : i32 to index
    %c0_14 = arith.constant 0 : index
    %c0_15 = arith.constant 0 : index
    %41 = vector.load %arg5[%40, %c0_14, %c0_15] : memref<2x1x96xf32, #tpu.memory_space<vmem>>, vector<1x1x96xf32>
    %42 = vector.shape_cast %41 : vector<1x1x96xf32> to vector<1x96xf32>
    %43 = arith.index_cast %c0_i32 : i32 to index
    %c0_16 = arith.constant 0 : index
    %c0_17 = arith.constant 0 : index
    %44 = vector.load %arg6[%43, %c0_16, %c0_17] : memref<2x32x32xbf16, #tpu.memory_space<vmem>>, vector<1x32x32xbf16>
    %45 = vector.shape_cast %44 : vector<1x32x32xbf16> to vector<32x32xbf16>
    %46 = arith.index_cast %c0_i32 : i32 to index
    %c0_18 = arith.constant 0 : index
    %c0_19 = arith.constant 0 : index
    %47 = vector.load %arg7[%46, %c0_18, %c0_19] : memref<2x32x64xbf16, #tpu.memory_space<vmem>>, vector<1x32x64xbf16>
    %48 = vector.shape_cast %47 : vector<1x32x64xbf16> to vector<32x64xbf16>
    %49 = arith.index_cast %c0_i32 : i32 to index
    %c0_20 = arith.constant 0 : index
    %c0_21 = arith.constant 0 : index
    %50 = vector.load %arg8[%49, %c0_20, %c0_21] : memref<2x64x32xbf16, #tpu.memory_space<vmem>>, vector<1x64x32xbf16>
    %51 = vector.shape_cast %50 : vector<1x64x32xbf16> to vector<64x32xbf16>
    %52 = arith.index_cast %c0_i32 : i32 to index
    %c0_22 = arith.constant 0 : index
    %c0_23 = arith.constant 0 : index
    %53 = vector.load %arg9[%52, %c0_22, %c0_23] : memref<2x8x32xf32, #tpu.memory_space<vmem>>, vector<1x8x32xf32>
    %54 = vector.shape_cast %53 : vector<1x8x32xf32> to vector<8x32xf32>
    %55 = arith.index_cast %c0_i32 : i32 to index
    %c0_24 = arith.constant 0 : index
    %c0_25 = arith.constant 0 : index
    %56 = vector.load %arg10[%55, %c0_24, %c0_25] : memref<2x1x64xf32, #tpu.memory_space<vmem>>, vector<1x1x64xf32>
    %57 = vector.shape_cast %56 : vector<1x1x64xf32> to vector<1x64xf32>
    %58 = vector.extract_strided_slice %54 {offsets = [0, 0], sizes = [1, 32], strides = [1, 1]} : vector<8x32xf32> to vector<1x32xf32>
    %59 = vector.extract_strided_slice %54 {offsets = [1, 0], sizes = [1, 32], strides = [1, 1]} : vector<8x32xf32> to vector<1x32xf32>
    %60 = vector.extract_strided_slice %54 {offsets = [2, 0], sizes = [1, 32], strides = [1, 1]} : vector<8x32xf32> to vector<1x32xf32>
    %61 = vector.extract_strided_slice %54 {offsets = [3, 0], sizes = [1, 32], strides = [1, 1]} : vector<8x32xf32> to vector<1x32xf32>
    %62 = vector.extract_strided_slice %54 {offsets = [4, 0], sizes = [1, 32], strides = [1, 1]} : vector<8x32xf32> to vector<1x32xf32>
    %63 = vector.extract_strided_slice %54 {offsets = [5, 0], sizes = [1, 32], strides = [1, 1]} : vector<8x32xf32> to vector<1x32xf32>
    %64 = arith.truncf %24 : vector<8x32xf32> to vector<8x32xbf16>
    %cst_26 = arith.constant dense<0.000000e+00> : vector<8x96xf32>
    %65 = tpu.matmul %64, %39, %cst_26 {dimension_numbers = #tpu.dot_dimension_numbers<[1], [0], [0], [1], [0, 0, 1, 1], [], []>} : vector<8x32xbf16>, vector<32x96xbf16>, vector<8x96xf32> -> vector<8x96xf32>
    %66 = vector.broadcast %42 : vector<1x96xf32> to vector<8x96xf32>
    %67 = arith.addf %65, %66 : vector<8x96xf32>
    %68 = vector.extract_strided_slice %67 {offsets = [0, 0], sizes = [8, 8], strides = [1, 1]} : vector<8x96xf32> to vector<8x8xf32>
    %69 = vector.extract_strided_slice %67 {offsets = [0, 8], sizes = [8, 8], strides = [1, 1]} : vector<8x96xf32> to vector<8x8xf32>
    %70 = vector.extract_strided_slice %67 {offsets = [0, 16], sizes = [8, 8], strides = [1, 1]} : vector<8x96xf32> to vector<8x8xf32>
    %71 = vector.extract_strided_slice %67 {offsets = [0, 24], sizes = [8, 8], strides = [1, 1]} : vector<8x96xf32> to vector<8x8xf32>
    %72 = tpu.concatenate %68, %69, %70, %71 in 0 : vector<8x8xf32>, vector<8x8xf32>, vector<8x8xf32>, vector<8x8xf32> -> vector<32x8xf32>
    %73 = vector.extract_strided_slice %67 {offsets = [0, 32], sizes = [8, 8], strides = [1, 1]} : vector<8x96xf32> to vector<8x8xf32>
    %74 = vector.extract_strided_slice %67 {offsets = [0, 40], sizes = [8, 8], strides = [1, 1]} : vector<8x96xf32> to vector<8x8xf32>
    %75 = vector.extract_strided_slice %67 {offsets = [0, 48], sizes = [8, 8], strides = [1, 1]} : vector<8x96xf32> to vector<8x8xf32>
    %76 = vector.extract_strided_slice %67 {offsets = [0, 56], sizes = [8, 8], strides = [1, 1]} : vector<8x96xf32> to vector<8x8xf32>
    %77 = tpu.concatenate %73, %74, %75, %76 in 0 : vector<8x8xf32>, vector<8x8xf32>, vector<8x8xf32>, vector<8x8xf32> -> vector<32x8xf32>
    %78 = vector.extract_strided_slice %67 {offsets = [0, 64], sizes = [8, 8], strides = [1, 1]} : vector<8x96xf32> to vector<8x8xf32>
    %79 = vector.extract_strided_slice %67 {offsets = [0, 72], sizes = [8, 8], strides = [1, 1]} : vector<8x96xf32> to vector<8x8xf32>
    %80 = vector.extract_strided_slice %67 {offsets = [0, 80], sizes = [8, 8], strides = [1, 1]} : vector<8x96xf32> to vector<8x8xf32>
    %81 = vector.extract_strided_slice %67 {offsets = [0, 88], sizes = [8, 8], strides = [1, 1]} : vector<8x96xf32> to vector<8x8xf32>
    %82 = tpu.concatenate %78, %79, %80, %81 in 0 : vector<8x8xf32>, vector<8x8xf32>, vector<8x8xf32>, vector<8x8xf32> -> vector<32x8xf32>
    %cst_27 = arith.constant dense<0.000000e+00> : vector<32x32xf32>
    %83 = tpu.matmul %72, %77, %cst_27 {dimension_numbers = #tpu.dot_dimension_numbers<[1], [1], [0], [0], [0, 0, 1, 0], [], []>} : vector<32x8xf32>, vector<32x8xf32>, vector<32x32xf32> -> vector<32x32xf32>
    %84 = arith.addf %83, %36 : vector<32x32xf32>
    %cst_28 = arith.constant dense<0xFF800000> : vector<32xf32>
    %85 = vector.multi_reduction <maximumf>, %84, %cst_28 [1] : vector<32x32xf32> to vector<32xf32>
    %86 = vector.shape_cast %85 : vector<32xf32> to vector<32x1xf32>
    %87 = vector.broadcast %86 : vector<32x1xf32> to vector<32x32xf32>
    %88 = arith.subf %84, %87 : vector<32x32xf32>
    %89 = math.exp %88 : vector<32x32xf32>
    %cst_29 = arith.constant dense<0.000000e+00> : vector<32xf32>
    %90 = vector.multi_reduction <add>, %89, %cst_29 [1] : vector<32x32xf32> to vector<32xf32>
    %91 = vector.shape_cast %90 : vector<32xf32> to vector<32x1xf32>
    %92 = tpu.reciprocal %91 {approx = true} : vector<32x1xf32> -> vector<32x1xf32>
    %93 = vector.broadcast %92 : vector<32x1xf32> to vector<32x32xf32>
    %94 = arith.mulf %89, %93 : vector<32x32xf32>
    %cst_30 = arith.constant dense<0.000000e+00> : vector<32x8xf32>
    %95 = tpu.matmul %94, %82, %cst_30 {dimension_numbers = #tpu.dot_dimension_numbers<[1], [0], [0], [1], [0, 0, 1, 1], [], []>} : vector<32x32xf32>, vector<32x8xf32>, vector<32x8xf32> -> vector<32x8xf32>
    %96 = vector.extract_strided_slice %95 {offsets = [0, 0], sizes = [8, 8], strides = [1, 1]} : vector<32x8xf32> to vector<8x8xf32>
    %97 = vector.extract_strided_slice %95 {offsets = [8, 0], sizes = [8, 8], strides = [1, 1]} : vector<32x8xf32> to vector<8x8xf32>
    %98 = vector.extract_strided_slice %95 {offsets = [16, 0], sizes = [8, 8], strides = [1, 1]} : vector<32x8xf32> to vector<8x8xf32>
    %99 = vector.extract_strided_slice %95 {offsets = [24, 0], sizes = [8, 8], strides = [1, 1]} : vector<32x8xf32> to vector<8x8xf32>
    %100 = tpu.concatenate %96, %97, %98, %99 in 1 : vector<8x8xf32>, vector<8x8xf32>, vector<8x8xf32>, vector<8x8xf32> -> vector<8x32xf32>
    %101 = arith.truncf %100 : vector<8x32xf32> to vector<8x32xbf16>
    %cst_31 = arith.constant dense<0.000000e+00> : vector<8x32xf32>
    %102 = tpu.matmul %101, %45, %cst_31 {dimension_numbers = #tpu.dot_dimension_numbers<[1], [0], [0], [1], [0, 0, 1, 1], [], []>} : vector<8x32xbf16>, vector<32x32xbf16>, vector<8x32xf32> -> vector<8x32xf32>
    %103 = vector.broadcast %58 : vector<1x32xf32> to vector<8x32xf32>
    %104 = arith.addf %102, %103 : vector<8x32xf32>
    %105 = arith.addf %104, %24 : vector<8x32xf32>
    %cst_32 = arith.constant dense<0.000000e+00> : vector<8xf32>
    %106 = vector.multi_reduction <add>, %105, %cst_32 [1] : vector<8x32xf32> to vector<8xf32>
    %107 = vector.shape_cast %106 : vector<8xf32> to vector<8x1xf32>
    %cst_33 = arith.constant 3.200000e+01 : f32
    %108 = vector.broadcast %cst_33 : f32 to vector<8x1xf32>
    %109 = arith.divf %107, %108 : vector<8x1xf32>
    %110 = vector.broadcast %109 : vector<8x1xf32> to vector<8x32xf32>
    %111 = arith.subf %105, %110 : vector<8x32xf32>
    %112 = arith.mulf %111, %111 : vector<8x32xf32>
    %cst_34 = arith.constant dense<0.000000e+00> : vector<8xf32>
    %113 = vector.multi_reduction <add>, %112, %cst_34 [1] : vector<8x32xf32> to vector<8xf32>
    %114 = vector.shape_cast %113 : vector<8xf32> to vector<8x1xf32>
    %cst_35 = arith.constant 3.200000e+01 : f32
    %115 = vector.broadcast %cst_35 : f32 to vector<8x1xf32>
    %116 = arith.divf %114, %115 : vector<8x1xf32>
    %117 = vector.broadcast %109 : vector<8x1xf32> to vector<8x32xf32>
    %118 = arith.subf %105, %117 : vector<8x32xf32>
    %cst_36 = arith.constant 9.99999996E-13 : f32
    %119 = vector.broadcast %cst_36 : f32 to vector<8x1xf32>
    %120 = arith.addf %116, %119 : vector<8x1xf32>
    %121 = math.rsqrt %120 : vector<8x1xf32>
    %122 = vector.broadcast %121 : vector<8x1xf32> to vector<8x32xf32>
    %123 = arith.mulf %118, %122 : vector<8x32xf32>
    %124 = vector.broadcast %59 : vector<1x32xf32> to vector<8x32xf32>
    %125 = arith.mulf %123, %124 : vector<8x32xf32>
    %126 = vector.broadcast %60 : vector<1x32xf32> to vector<8x32xf32>
    %127 = arith.addf %125, %126 : vector<8x32xf32>
    %128 = arith.truncf %127 : vector<8x32xf32> to vector<8x32xbf16>
    %cst_37 = arith.constant dense<0.000000e+00> : vector<8x64xf32>
    %129 = tpu.matmul %128, %48, %cst_37 {dimension_numbers = #tpu.dot_dimension_numbers<[1], [0], [0], [1], [0, 0, 1, 1], [], []>} : vector<8x32xbf16>, vector<32x64xbf16>, vector<8x64xf32> -> vector<8x64xf32>
    %130 = vector.broadcast %57 : vector<1x64xf32> to vector<8x64xf32>
    %131 = arith.addf %129, %130 : vector<8x64xf32>
    %cst_38 = arith.constant 5.000000e-01 : f32
    %132 = vector.broadcast %cst_38 : f32 to vector<8x64xf32>
    %133 = arith.mulf %132, %131 : vector<8x64xf32>
    %cst_39 = arith.constant 4.471500e-02 : f32
    %134 = vector.broadcast %cst_39 : f32 to vector<8x64xf32>
    %135 = arith.mulf %134, %131 : vector<8x64xf32>
    %136 = arith.mulf %135, %131 : vector<8x64xf32>
    %137 = arith.mulf %136, %131 : vector<8x64xf32>
    %138 = arith.addf %131, %137 : vector<8x64xf32>
    %cst_40 = arith.constant 0.797884583 : f32
    %139 = vector.broadcast %cst_40 : f32 to vector<8x64xf32>
    %140 = arith.mulf %139, %138 : vector<8x64xf32>
    %141 = math.tanh %140 : vector<8x64xf32>
    %cst_41 = arith.constant 1.000000e+00 : f32
    %142 = vector.broadcast %cst_41 : f32 to vector<8x64xf32>
    %143 = arith.addf %142, %141 : vector<8x64xf32>
    %144 = arith.mulf %133, %143 : vector<8x64xf32>
    %145 = arith.truncf %144 : vector<8x64xf32> to vector<8x64xbf16>
    %cst_42 = arith.constant dense<0.000000e+00> : vector<8x32xf32>
    %146 = tpu.matmul %145, %51, %cst_42 {dimension_numbers = #tpu.dot_dimension_numbers<[1], [0], [0], [1], [0, 0, 1, 1], [], []>} : vector<8x64xbf16>, vector<64x32xbf16>, vector<8x32xf32> -> vector<8x32xf32>
    %147 = vector.broadcast %61 : vector<1x32xf32> to vector<8x32xf32>
    %148 = arith.addf %146, %147 : vector<8x32xf32>
    %149 = arith.addf %148, %127 : vector<8x32xf32>
    %cst_43 = arith.constant dense<0.000000e+00> : vector<8xf32>
    %150 = vector.multi_reduction <add>, %149, %cst_43 [1] : vector<8x32xf32> to vector<8xf32>
    %151 = vector.shape_cast %150 : vector<8xf32> to vector<8x1xf32>
    %cst_44 = arith.constant 3.200000e+01 : f32
    %152 = vector.broadcast %cst_44 : f32 to vector<8x1xf32>
    %153 = arith.divf %151, %152 : vector<8x1xf32>
    %154 = vector.broadcast %153 : vector<8x1xf32> to vector<8x32xf32>
    %155 = arith.subf %149, %154 : vector<8x32xf32>
    %156 = arith.mulf %155, %155 : vector<8x32xf32>
    %cst_45 = arith.constant dense<0.000000e+00> : vector<8xf32>
    %157 = vector.multi_reduction <add>, %156, %cst_45 [1] : vector<8x32xf32> to vector<8xf32>
    %158 = vector.shape_cast %157 : vector<8xf32> to vector<8x1xf32>
    %cst_46 = arith.constant 3.200000e+01 : f32
    %159 = vector.broadcast %cst_46 : f32 to vector<8x1xf32>
    %160 = arith.divf %158, %159 : vector<8x1xf32>
    %161 = vector.broadcast %153 : vector<8x1xf32> to vector<8x32xf32>
    %162 = arith.subf %149, %161 : vector<8x32xf32>
    %cst_47 = arith.constant 9.99999996E-13 : f32
    %163 = vector.broadcast %cst_47 : f32 to vector<8x1xf32>
    %164 = arith.addf %160, %163 : vector<8x1xf32>
    %165 = math.rsqrt %164 : vector<8x1xf32>
    %166 = vector.broadcast %165 : vector<8x1xf32> to vector<8x32xf32>
    %167 = arith.mulf %162, %166 : vector<8x32xf32>
    %168 = vector.broadcast %62 : vector<1x32xf32> to vector<8x32xf32>
    %169 = arith.mulf %167, %168 : vector<8x32xf32>
    %170 = vector.broadcast %63 : vector<1x32xf32> to vector<8x32xf32>
    %171 = arith.addf %169, %170 : vector<8x32xf32>
    %c1_i32 = arith.constant 1 : i32
    %172 = arith.index_cast %c1_i32 : i32 to index
    %c0_48 = arith.constant 0 : index
    %c0_49 = arith.constant 0 : index
    %173 = vector.load %arg4[%172, %c0_48, %c0_49] : memref<2x32x96xbf16, #tpu.memory_space<vmem>>, vector<1x32x96xbf16>
    %174 = vector.shape_cast %173 : vector<1x32x96xbf16> to vector<32x96xbf16>
    %175 = arith.index_cast %c1_i32 : i32 to index
    %c0_50 = arith.constant 0 : index
    %c0_51 = arith.constant 0 : index
    %176 = vector.load %arg5[%175, %c0_50, %c0_51] : memref<2x1x96xf32, #tpu.memory_space<vmem>>, vector<1x1x96xf32>
    %177 = vector.shape_cast %176 : vector<1x1x96xf32> to vector<1x96xf32>
    %178 = arith.index_cast %c1_i32 : i32 to index
    %c0_52 = arith.constant 0 : index
    %c0_53 = arith.constant 0 : index
    %179 = vector.load %arg6[%178, %c0_52, %c0_53] : memref<2x32x32xbf16, #tpu.memory_space<vmem>>, vector<1x32x32xbf16>
    %180 = vector.shape_cast %179 : vector<1x32x32xbf16> to vector<32x32xbf16>
    %181 = arith.index_cast %c1_i32 : i32 to index
    %c0_54 = arith.constant 0 : index
    %c0_55 = arith.constant 0 : index
    %182 = vector.load %arg7[%181, %c0_54, %c0_55] : memref<2x32x64xbf16, #tpu.memory_space<vmem>>, vector<1x32x64xbf16>
    %183 = vector.shape_cast %182 : vector<1x32x64xbf16> to vector<32x64xbf16>
    %184 = arith.index_cast %c1_i32 : i32 to index
    %c0_56 = arith.constant 0 : index
    %c0_57 = arith.constant 0 : index
    %185 = vector.load %arg8[%184, %c0_56, %c0_57] : memref<2x64x32xbf16, #tpu.memory_space<vmem>>, vector<1x64x32xbf16>
    %186 = vector.shape_cast %185 : vector<1x64x32xbf16> to vector<64x32xbf16>
    %187 = arith.index_cast %c1_i32 : i32 to index
    %c0_58 = arith.constant 0 : index
    %c0_59 = arith.constant 0 : index
    %188 = vector.load %arg9[%187, %c0_58, %c0_59] : memref<2x8x32xf32, #tpu.memory_space<vmem>>, vector<1x8x32xf32>
    %189 = vector.shape_cast %188 : vector<1x8x32xf32> to vector<8x32xf32>
    %190 = arith.index_cast %c1_i32 : i32 to index
    %c0_60 = arith.constant 0 : index
    %c0_61 = arith.constant 0 : index
    %191 = vector.load %arg10[%190, %c0_60, %c0_61] : memref<2x1x64xf32, #tpu.memory_space<vmem>>, vector<1x1x64xf32>
    %192 = vector.shape_cast %191 : vector<1x1x64xf32> to vector<1x64xf32>
    %193 = vector.extract_strided_slice %189 {offsets = [0, 0], sizes = [1, 32], strides = [1, 1]} : vector<8x32xf32> to vector<1x32xf32>
    %194 = vector.extract_strided_slice %189 {offsets = [1, 0], sizes = [1, 32], strides = [1, 1]} : vector<8x32xf32> to vector<1x32xf32>
    %195 = vector.extract_strided_slice %189 {offsets = [2, 0], sizes = [1, 32], strides = [1, 1]} : vector<8x32xf32> to vector<1x32xf32>
    %196 = vector.extract_strided_slice %189 {offsets = [3, 0], sizes = [1, 32], strides = [1, 1]} : vector<8x32xf32> to vector<1x32xf32>
    %197 = vector.extract_strided_slice %189 {offsets = [4, 0], sizes = [1, 32], strides = [1, 1]} : vector<8x32xf32> to vector<1x32xf32>
    %198 = vector.extract_strided_slice %189 {offsets = [5, 0], sizes = [1, 32], strides = [1, 1]} : vector<8x32xf32> to vector<1x32xf32>
    %199 = arith.truncf %171 : vector<8x32xf32> to vector<8x32xbf16>
    %cst_62 = arith.constant dense<0.000000e+00> : vector<8x96xf32>
    %200 = tpu.matmul %199, %174, %cst_62 {dimension_numbers = #tpu.dot_dimension_numbers<[1], [0], [0], [1], [0, 0, 1, 1], [], []>} : vector<8x32xbf16>, vector<32x96xbf16>, vector<8x96xf32> -> vector<8x96xf32>
    %201 = vector.broadcast %177 : vector<1x96xf32> to vector<8x96xf32>
    %202 = arith.addf %200, %201 : vector<8x96xf32>
    %203 = vector.extract_strided_slice %202 {offsets = [0, 0], sizes = [8, 8], strides = [1, 1]} : vector<8x96xf32> to vector<8x8xf32>
    %204 = vector.extract_strided_slice %202 {offsets = [0, 8], sizes = [8, 8], strides = [1, 1]} : vector<8x96xf32> to vector<8x8xf32>
    %205 = vector.extract_strided_slice %202 {offsets = [0, 16], sizes = [8, 8], strides = [1, 1]} : vector<8x96xf32> to vector<8x8xf32>
    %206 = vector.extract_strided_slice %202 {offsets = [0, 24], sizes = [8, 8], strides = [1, 1]} : vector<8x96xf32> to vector<8x8xf32>
    %207 = tpu.concatenate %203, %204, %205, %206 in 0 : vector<8x8xf32>, vector<8x8xf32>, vector<8x8xf32>, vector<8x8xf32> -> vector<32x8xf32>
    %208 = vector.extract_strided_slice %202 {offsets = [0, 32], sizes = [8, 8], strides = [1, 1]} : vector<8x96xf32> to vector<8x8xf32>
    %209 = vector.extract_strided_slice %202 {offsets = [0, 40], sizes = [8, 8], strides = [1, 1]} : vector<8x96xf32> to vector<8x8xf32>
    %210 = vector.extract_strided_slice %202 {offsets = [0, 48], sizes = [8, 8], strides = [1, 1]} : vector<8x96xf32> to vector<8x8xf32>
    %211 = vector.extract_strided_slice %202 {offsets = [0, 56], sizes = [8, 8], strides = [1, 1]} : vector<8x96xf32> to vector<8x8xf32>
    %212 = tpu.concatenate %208, %209, %210, %211 in 0 : vector<8x8xf32>, vector<8x8xf32>, vector<8x8xf32>, vector<8x8xf32> -> vector<32x8xf32>
    %213 = vector.extract_strided_slice %202 {offsets = [0, 64], sizes = [8, 8], strides = [1, 1]} : vector<8x96xf32> to vector<8x8xf32>
    %214 = vector.extract_strided_slice %202 {offsets = [0, 72], sizes = [8, 8], strides = [1, 1]} : vector<8x96xf32> to vector<8x8xf32>
    %215 = vector.extract_strided_slice %202 {offsets = [0, 80], sizes = [8, 8], strides = [1, 1]} : vector<8x96xf32> to vector<8x8xf32>
    %216 = vector.extract_strided_slice %202 {offsets = [0, 88], sizes = [8, 8], strides = [1, 1]} : vector<8x96xf32> to vector<8x8xf32>
    %217 = tpu.concatenate %213, %214, %215, %216 in 0 : vector<8x8xf32>, vector<8x8xf32>, vector<8x8xf32>, vector<8x8xf32> -> vector<32x8xf32>
    %cst_63 = arith.constant dense<0.000000e+00> : vector<32x32xf32>
    %218 = tpu.matmul %207, %212, %cst_63 {dimension_numbers = #tpu.dot_dimension_numbers<[1], [1], [0], [0], [0, 0, 1, 0], [], []>} : vector<32x8xf32>, vector<32x8xf32>, vector<32x32xf32> -> vector<32x32xf32>
    %219 = arith.addf %218, %36 : vector<32x32xf32>
    %cst_64 = arith.constant dense<0xFF800000> : vector<32xf32>
    %220 = vector.multi_reduction <maximumf>, %219, %cst_64 [1] : vector<32x32xf32> to vector<32xf32>
    %221 = vector.shape_cast %220 : vector<32xf32> to vector<32x1xf32>
    %222 = vector.broadcast %221 : vector<32x1xf32> to vector<32x32xf32>
    %223 = arith.subf %219, %222 : vector<32x32xf32>
    %224 = math.exp %223 : vector<32x32xf32>
    %cst_65 = arith.constant dense<0.000000e+00> : vector<32xf32>
    %225 = vector.multi_reduction <add>, %224, %cst_65 [1] : vector<32x32xf32> to vector<32xf32>
    %226 = vector.shape_cast %225 : vector<32xf32> to vector<32x1xf32>
    %227 = tpu.reciprocal %226 {approx = true} : vector<32x1xf32> -> vector<32x1xf32>
    %228 = vector.broadcast %227 : vector<32x1xf32> to vector<32x32xf32>
    %229 = arith.mulf %224, %228 : vector<32x32xf32>
    %cst_66 = arith.constant dense<0.000000e+00> : vector<32x8xf32>
    %230 = tpu.matmul %229, %217, %cst_66 {dimension_numbers = #tpu.dot_dimension_numbers<[1], [0], [0], [1], [0, 0, 1, 1], [], []>} : vector<32x32xf32>, vector<32x8xf32>, vector<32x8xf32> -> vector<32x8xf32>
    %231 = vector.extract_strided_slice %230 {offsets = [0, 0], sizes = [8, 8], strides = [1, 1]} : vector<32x8xf32> to vector<8x8xf32>
    %232 = vector.extract_strided_slice %230 {offsets = [8, 0], sizes = [8, 8], strides = [1, 1]} : vector<32x8xf32> to vector<8x8xf32>
    %233 = vector.extract_strided_slice %230 {offsets = [16, 0], sizes = [8, 8], strides = [1, 1]} : vector<32x8xf32> to vector<8x8xf32>
    %234 = vector.extract_strided_slice %230 {offsets = [24, 0], sizes = [8, 8], strides = [1, 1]} : vector<32x8xf32> to vector<8x8xf32>
    %235 = tpu.concatenate %231, %232, %233, %234 in 1 : vector<8x8xf32>, vector<8x8xf32>, vector<8x8xf32>, vector<8x8xf32> -> vector<8x32xf32>
    %236 = arith.truncf %235 : vector<8x32xf32> to vector<8x32xbf16>
    %cst_67 = arith.constant dense<0.000000e+00> : vector<8x32xf32>
    %237 = tpu.matmul %236, %180, %cst_67 {dimension_numbers = #tpu.dot_dimension_numbers<[1], [0], [0], [1], [0, 0, 1, 1], [], []>} : vector<8x32xbf16>, vector<32x32xbf16>, vector<8x32xf32> -> vector<8x32xf32>
    %238 = vector.broadcast %193 : vector<1x32xf32> to vector<8x32xf32>
    %239 = arith.addf %237, %238 : vector<8x32xf32>
    %240 = arith.addf %239, %171 : vector<8x32xf32>
    %cst_68 = arith.constant dense<0.000000e+00> : vector<8xf32>
    %241 = vector.multi_reduction <add>, %240, %cst_68 [1] : vector<8x32xf32> to vector<8xf32>
    %242 = vector.shape_cast %241 : vector<8xf32> to vector<8x1xf32>
    %cst_69 = arith.constant 3.200000e+01 : f32
    %243 = vector.broadcast %cst_69 : f32 to vector<8x1xf32>
    %244 = arith.divf %242, %243 : vector<8x1xf32>
    %245 = vector.broadcast %244 : vector<8x1xf32> to vector<8x32xf32>
    %246 = arith.subf %240, %245 : vector<8x32xf32>
    %247 = arith.mulf %246, %246 : vector<8x32xf32>
    %cst_70 = arith.constant dense<0.000000e+00> : vector<8xf32>
    %248 = vector.multi_reduction <add>, %247, %cst_70 [1] : vector<8x32xf32> to vector<8xf32>
    %249 = vector.shape_cast %248 : vector<8xf32> to vector<8x1xf32>
    %cst_71 = arith.constant 3.200000e+01 : f32
    %250 = vector.broadcast %cst_71 : f32 to vector<8x1xf32>
    %251 = arith.divf %249, %250 : vector<8x1xf32>
    %252 = vector.broadcast %244 : vector<8x1xf32> to vector<8x32xf32>
    %253 = arith.subf %240, %252 : vector<8x32xf32>
    %cst_72 = arith.constant 9.99999996E-13 : f32
    %254 = vector.broadcast %cst_72 : f32 to vector<8x1xf32>
    %255 = arith.addf %251, %254 : vector<8x1xf32>
    %256 = math.rsqrt %255 : vector<8x1xf32>
    %257 = vector.broadcast %256 : vector<8x1xf32> to vector<8x32xf32>
    %258 = arith.mulf %253, %257 : vector<8x32xf32>
    %259 = vector.broadcast %194 : vector<1x32xf32> to vector<8x32xf32>
    %260 = arith.mulf %258, %259 : vector<8x32xf32>
    %261 = vector.broadcast %195 : vector<1x32xf32> to vector<8x32xf32>
    %262 = arith.addf %260, %261 : vector<8x32xf32>
    %263 = arith.truncf %262 : vector<8x32xf32> to vector<8x32xbf16>
    %cst_73 = arith.constant dense<0.000000e+00> : vector<8x64xf32>
    %264 = tpu.matmul %263, %183, %cst_73 {dimension_numbers = #tpu.dot_dimension_numbers<[1], [0], [0], [1], [0, 0, 1, 1], [], []>} : vector<8x32xbf16>, vector<32x64xbf16>, vector<8x64xf32> -> vector<8x64xf32>
    %265 = vector.broadcast %192 : vector<1x64xf32> to vector<8x64xf32>
    %266 = arith.addf %264, %265 : vector<8x64xf32>
    %cst_74 = arith.constant 5.000000e-01 : f32
    %267 = vector.broadcast %cst_74 : f32 to vector<8x64xf32>
    %268 = arith.mulf %267, %266 : vector<8x64xf32>
    %cst_75 = arith.constant 4.471500e-02 : f32
    %269 = vector.broadcast %cst_75 : f32 to vector<8x64xf32>
    %270 = arith.mulf %269, %266 : vector<8x64xf32>
    %271 = arith.mulf %270, %266 : vector<8x64xf32>
    %272 = arith.mulf %271, %266 : vector<8x64xf32>
    %273 = arith.addf %266, %272 : vector<8x64xf32>
    %cst_76 = arith.constant 0.797884583 : f32
    %274 = vector.broadcast %cst_76 : f32 to vector<8x64xf32>
    %275 = arith.mulf %274, %273 : vector<8x64xf32>
    %276 = math.tanh %275 : vector<8x64xf32>
    %cst_77 = arith.constant 1.000000e+00 : f32
    %277 = vector.broadcast %cst_77 : f32 to vector<8x64xf32>
    %278 = arith.addf %277, %276 : vector<8x64xf32>
    %279 = arith.mulf %268, %278 : vector<8x64xf32>
    %280 = arith.truncf %279 : vector<8x64xf32> to vector<8x64xbf16>
    %cst_78 = arith.constant dense<0.000000e+00> : vector<8x32xf32>
    %281 = tpu.matmul %280, %186, %cst_78 {dimension_numbers = #tpu.dot_dimension_numbers<[1], [0], [0], [1], [0, 0, 1, 1], [], []>} : vector<8x64xbf16>, vector<64x32xbf16>, vector<8x32xf32> -> vector<8x32xf32>
    %282 = vector.broadcast %196 : vector<1x32xf32> to vector<8x32xf32>
    %283 = arith.addf %281, %282 : vector<8x32xf32>
    %284 = arith.addf %283, %262 : vector<8x32xf32>
    %cst_79 = arith.constant dense<0.000000e+00> : vector<8xf32>
    %285 = vector.multi_reduction <add>, %284, %cst_79 [1] : vector<8x32xf32> to vector<8xf32>
    %286 = vector.shape_cast %285 : vector<8xf32> to vector<8x1xf32>
    %cst_80 = arith.constant 3.200000e+01 : f32
    %287 = vector.broadcast %cst_80 : f32 to vector<8x1xf32>
    %288 = arith.divf %286, %287 : vector<8x1xf32>
    %289 = vector.broadcast %288 : vector<8x1xf32> to vector<8x32xf32>
    %290 = arith.subf %284, %289 : vector<8x32xf32>
    %291 = arith.mulf %290, %290 : vector<8x32xf32>
    %cst_81 = arith.constant dense<0.000000e+00> : vector<8xf32>
    %292 = vector.multi_reduction <add>, %291, %cst_81 [1] : vector<8x32xf32> to vector<8xf32>
    %293 = vector.shape_cast %292 : vector<8xf32> to vector<8x1xf32>
    %cst_82 = arith.constant 3.200000e+01 : f32
    %294 = vector.broadcast %cst_82 : f32 to vector<8x1xf32>
    %295 = arith.divf %293, %294 : vector<8x1xf32>
    %296 = vector.broadcast %288 : vector<8x1xf32> to vector<8x32xf32>
    %297 = arith.subf %284, %296 : vector<8x32xf32>
    %cst_83 = arith.constant 9.99999996E-13 : f32
    %298 = vector.broadcast %cst_83 : f32 to vector<8x1xf32>
    %299 = arith.addf %295, %298 : vector<8x1xf32>
    %300 = math.rsqrt %299 : vector<8x1xf32>
    %301 = vector.broadcast %300 : vector<8x1xf32> to vector<8x32xf32>
    %302 = arith.mulf %297, %301 : vector<8x32xf32>
    %303 = vector.broadcast %197 : vector<1x32xf32> to vector<8x32xf32>
    %304 = arith.mulf %302, %303 : vector<8x32xf32>
    %305 = vector.broadcast %198 : vector<1x32xf32> to vector<8x32xf32>
    %306 = arith.addf %304, %305 : vector<8x32xf32>
    %c2_i32 = arith.constant 2 : i32
    %307 = vector.extract_strided_slice %306 {offsets = [0, 0], sizes = [1, 32], strides = [1, 1]} : vector<8x32xf32> to vector<1x32xf32>
    %308 = arith.truncf %307 : vector<1x32xf32> to vector<1x32xbf16>
    %c0_84 = arith.constant 0 : index
    %c0_85 = arith.constant 0 : index
    %309 = vector.load %arg11[%c0_84, %c0_85] : memref<32x32xbf16, #tpu.memory_space<vmem>>, vector<32x32xbf16>
    %cst_86 = arith.constant dense<0.000000e+00> : vector<1x32xf32>
    %310 = tpu.matmul %308, %309, %cst_86 {dimension_numbers = #tpu.dot_dimension_numbers<[1], [0], [0], [1], [0, 0, 1, 1], [], []>} : vector<1x32xbf16>, vector<32x32xbf16>, vector<1x32xf32> -> vector<1x32xf32>
    %c0_87 = arith.constant 0 : index
    %c0_88 = arith.constant 0 : index
    %311 = vector.load %arg12[%c0_87, %c0_88] : memref<1x32xf32, #tpu.memory_space<vmem>>, vector<1x32xf32>
    %312 = arith.addf %310, %311 : vector<1x32xf32>
    %313 = math.tanh %312 : vector<1x32xf32>
    %314 = arith.truncf %313 : vector<1x32xf32> to vector<1x32xbf16>
    %c0_89 = arith.constant 0 : index
    %c0_90 = arith.constant 0 : index
    %315 = vector.load %arg13[%c0_89, %c0_90] : memref<32x128xbf16, #tpu.memory_space<vmem>>, vector<32x128xbf16>
    %cst_91 = arith.constant dense<0.000000e+00> : vector<1x128xf32>
    %316 = tpu.matmul %314, %315, %cst_91 {dimension_numbers = #tpu.dot_dimension_numbers<[1], [0], [0], [1], [0, 0, 1, 1], [], []>} : vector<1x32xbf16>, vector<32x128xbf16>, vector<1x128xf32> -> vector<1x128xf32>
    %c0_92 = arith.constant 0 : index
    %c0_93 = arith.constant 0 : index
    %317 = vector.load %arg14[%c0_92, %c0_93] : memref<1x128xf32, #tpu.memory_space<vmem>>, vector<1x128xf32>
    %318 = arith.addf %316, %317 : vector<1x128xf32>
    %319 = vector.shape_cast %318 : vector<1x128xf32> to vector<1x128xf32>
    %320 = vector.broadcast %319 : vector<1x128xf32> to vector<8x128xf32>
    %c0_94 = arith.constant 0 : index
    %c0_95 = arith.constant 0 : index
    %321 = vector.load %arg15[%c0_94, %c0_95] : memref<8x128xf32, #tpu.memory_space<vmem>>, vector<8x128xf32>
    tpu.vector_store %arg15[%c0_94, %c0_95], %320 {strides = array<i32>} : memref<8x128xf32, #tpu.memory_space<vmem>>, vector<8x128xf32>,
    return
  }
  func.func @transform_0(%arg0: i32) -> (i32, i32) {
    %c0_i32 = arith.constant 0 : i32
    %c0_i32_0 = arith.constant 0 : i32
    return %arg0, %c0_i32 : i32, i32
  }
  func.func @transform_1(%arg0: i32) -> (i32, i32) {
    %c0_i32 = arith.constant 0 : i32
    %c0_i32_0 = arith.constant 0 : i32
    return %arg0, %c0_i32 : i32, i32
  }
  func.func @transform_2(%arg0: i32) -> (i32, i32) {
    %c0_i32 = arith.constant 0 : i32
    %c0_i32_0 = arith.constant 0 : i32
    %c0_i32_1 = arith.constant 0 : i32
    return %c0_i32, %c0_i32_0 : i32, i32
  }
  func.func @transform_3(%arg0: i32) -> (i32, i32, i32) {
    %c0_i32 = arith.constant 0 : i32
    %c0_i32_0 = arith.constant 0 : i32
    %c0_i32_1 = arith.constant 0 : i32
    %c0_i32_2 = arith.constant 0 : i32
    return %c0_i32, %c0_i32_0, %c0_i32_1 : i32, i32, i32
  }
  func.func @transform_4(%arg0: i32) -> (i32, i32, i32) {
    %c0_i32 = arith.constant 0 : i32
    %c0_i32_0 = arith.constant 0 : i32
    %c0_i32_1 = arith.constant 0 : i32
    %c0_i32_2 = arith.constant 0 : i32
    return %c0_i32, %c0_i32_0, %c0_i32_1 : i32, i32, i32
  }
  func.func @transform_5(%arg0: i32) -> (i32, i32, i32) {
    %c0_i32 = arith.constant 0 : i32
    %c0_i32_0 = arith.constant 0 : i32
    %c0_i32_1 = arith.constant 0 : i32
    %c0_i32_2 = arith.constant 0 : i32
    return %c0_i32, %c0_i32_0, %c0_i32_1 : i32, i32, i32
  }
  func.func @transform_6(%arg0: i32) -> (i32, i32, i32) {
    %c0_i32 = arith.constant 0 : i32
    %c0_i32_0 = arith.constant 0 : i32
    %c0_i32_1 = arith.constant 0 : i32
    %c0_i32_2 = arith.constant 0 : i32
    return %c0_i32, %c0_i32_0, %c0_i32_1 : i32, i32, i32
  }
  func.func @transform_7(%arg0: i32) -> (i32, i32, i32) {
    %c0_i32 = arith.constant 0 : i32
    %c0_i32_0 = arith.constant 0 : i32
    %c0_i32_1 = arith.constant 0 : i32
    %c0_i32_2 = arith.constant 0 : i32
    return %c0_i32, %c0_i32_0, %c0_i32_1 : i32, i32, i32
  }
  func.func @transform_8(%arg0: i32) -> (i32, i32, i32) {
    %c0_i32 = arith.constant 0 : i32
    %c0_i32_0 = arith.constant 0 : i32
    %c0_i32_1 = arith.constant 0 : i32
    %c0_i32_2 = arith.constant 0 : i32
    return %c0_i32, %c0_i32_0, %c0_i32_1 : i32, i32, i32
  }
  func.func @transform_9(%arg0: i32) -> (i32, i32, i32) {
    %c0_i32 = arith.constant 0 : i32
    %c0_i32_0 = arith.constant 0 : i32
    %c0_i32_1 = arith.constant 0 : i32
    %c0_i32_2 = arith.constant 0 : i32
    return %c0_i32, %c0_i32_0, %c0_i32_1 : i32, i32, i32
  }
  func.func @transform_10(%arg0: i32) -> (i32, i32) {
    %c0_i32 = arith.constant 0 : i32
    %c0_i32_0 = arith.constant 0 : i32
    %c0_i32_1 = arith.constant 0 : i32
    return %c0_i32, %c0_i32_0 : i32, i32
  }
  func.func @transform_11(%arg0: i32) -> (i32, i32) {
    %c0_i32 = arith.constant 0 : i32
    %c0_i32_0 = arith.constant 0 : i32
    %c0_i32_1 = arith.constant 0 : i32
    return %c0_i32, %c0_i32_0 : i32, i32
  }
  func.func @transform_12(%arg0: i32) -> (i32, i32) {
    %c0_i32 = arith.constant 0 : i32
    %c0_i32_0 = arith.constant 0 : i32
    %c0_i32_1 = arith.constant 0 : i32
    return %c0_i32, %c0_i32_0 : i32, i32
  }
  func.func @transform_13(%arg0: i32) -> (i32, i32) {
    %c0_i32 = arith.constant 0 : i32
    %c0_i32_0 = arith.constant 0 : i32
    %c0_i32_1 = arith.constant 0 : i32
    return %c0_i32, %c0_i32_0 : i32, i32
  }
  func.func @transform_14(%arg0: i32) -> (i32, i32) {
    %c0_i32 = arith.constant 0 : i32
    %c0_i32_0 = arith.constant 0 : i32
    return %arg0, %c0_i32 : i32, i32
  }
}

</mosaic_0001>

<bundles_post_ra>
// kernel: forward.1
= control target key start
LH: loop header
LB: loop body
LE: loop exit
PB: predicated region body
PF: predicated region fallthrough
CT: control target
= control target key end

     0   :  { %s2469_s29 = smov 0   ;;  %s2852_s0 = inlined_call_operand.vmem [shape: f32[16,32], index: 0, kind: input, shape index: {}]   ;;  %s2853_s1 = inlined_call_operand.vmem [shape: f32[16,32], index: 1, kind: input, shape index: {}]   ;;  %s2854_s2 = inlined_call_operand.vmem [shape: f32[2,32], index: 2, kind: input, shape index: {}]   ;;  %s2855_s3 = inlined_call_operand.vmem [shape: bf16[2,32,96], index: 3, kind: input, shape index: {}]   ;;  %s2856_s4 = inlined_call_operand.vmem [shape: f32[2,1,96], index: 4, kind: input, shape index: {}]   ;;  %s2857_s5 = inlined_call_operand.vmem [shape: bf16[2,32,32], index: 5, kind: input, shape index: {}]   ;;  %s2858_s6 = inlined_call_operand.vmem [shape: bf16[2,32,64], index: 6, kind: input, shape index: {}]   ;;  %s2859_s7 = inlined_call_operand.vmem [shape: bf16[2,64,32], index: 7, kind: input, shape index: {}]   ;;  %s2860_s8 = inlined_call_operand.vmem [shape: f32[2,8,32], index: 8, kind: input, shape index: {}]   ;;  %s2861_s9 = inlined_call_operand.vmem [shape: f32[2,1,64], index: 9, kind: input, shape index: {}]   ;;  %s2862_s10 = inlined_call_operand.vmem [shape: bf16[32,32], index: 10, kind: input, shape index: {}]   ;;  %s2863_s11 = inlined_call_operand.vmem [shape: f32[1,32], index: 11, kind: input, shape index: {}]   ;;  %s2864_s12 = inlined_call_operand.vmem [shape: bf16[32,128], index: 12, kind: input, shape index: {}]   ;;  %s2865_s13 = inlined_call_operand.vmem [shape: f32[1,128], index: 13, kind: input, shape index: {}]   ;;  %s2866_s14 = inlined_call_operand.vmem [shape: f32[16,128], index: 14, kind: output, shape index: {}]  }
   0x1 LB: > { %s1978_s30 = sadd.s32 4294967295, %s2382_s29   ;;  %p1982_p0 = scmp.ge.s32.totalorder %s2382_s29, 1  ;;  %s2382_s29 = sphi %s2469_s29, %s24_s29  }
   0x2   : > { %p420_p1 = scmp.lt.s32.totalorder %s2382_s29, 3 }
   0x4   : > { %p421_p2 = pnand %p1982_p0, %p420_p1 }
   0x5   : > { %p468_p3 = scmp.lt.s32.totalorder (!%p421_p2), %s1978_s30, 1  ;;  %s2387_s16 = smov (!%p421_p2), 104  }
   0x6   : > { %424 = sbr.rel (%p421_p2) target bundleno = 5849 (0x16d9), region = 76  ;;  %s2388_s17 = smov (!%p421_p2), 112  }
   0x7   : > { %s2390_s22 = smov (!%p421_p2), 64   ;;  %s2391_s25 = smov (!%p421_p2), 8  }
   0x8   : > { %s2868_s28 = smov (!%p421_p2), 24   ;;  %s2867_s19 = smov (!%p421_p2), 16  }
   0x9   : > { %s2870_s20 = smov (!%p421_p2), 16  }
   0xb   : > { %s2872_s30 = smov (!%p468_p3, %s1978_s30), 1  ;;  %vm484_vm0 = vcmask 261120   ;;  %v2304_v7 = vld [vmem:[%s2855_s3 + $0x8] sm:$0xff]   ;;  %v2384_v8 = vmov 0.0   ;;  %vm2385_vm1 = vmmov 0   ;;  %v2305_v9 = vld [vmem:[%s2855_s3] sm:$0xff]   ;;  %v509_v33 = vlaneseq }
   0xc   : > { %s2477_s15 = sshll.u32 %s2872_s30, 3  ;;  %2142 = vmatprep.subr.bf16.mxu0 %v2384_v8  ;;  %2146 = vmatprep.mubr.msk.bf16.mxu0 %vm2385_vm1, %v2384_v8  ;;  %v1986_v14 = vld [vmem:[%s2854_s2] ss:$0 sm:$0xff]  ;;  %v1987_v16 = vld [vmem:[%s2854_s2 + $0x1] ss:$0 sm:$0xff]  ;;  %vm634_vm2 = vcmask 64512  }
   0xd   : > { %s471_s18 = scalar_lea.vmem %s2852_s0, %s2477_s15  ;;  %2143 = vmatpush3.bf16.msra.mxu0 %v2304_v7  ;;  %v1989_v20 = vld [vmem:[%s2856_s4] ss:$0 sm:$0xff]  ;;  %s2386_s30 = smov 120   ;;  %v2546_v34 = vshrl.u32 %v509_v33, 7  ;;  %v519_v36 = vand.u32 127, %v509_v33  ;;  %vm902_vm7 = vcmask 130048  }
   0xe   : > { %v481_v0 = vld [vmem:[%s471_s18] sm:$0xff]  ;;  %2144 = vmatprep.subr.bf16.mxu0 %v2384_v8  ;;  %s2389_s18 = smov 96   ;;  %s475_s21 = scalar_lea.vmem %s2853_s1, %s2477_s15  ;;  %vm904_vm8 = vcmask 195584   ;;  %vm1090_vm9 = vcmask 523264  }
   0xf   : > { %v485_v1 = vsel %vm484_vm0, %v481_v0, 0.0  ;;  %v511_v35 = vadd.s32 8, %v2546_v34  ;;  %v520_v38 = vshrl.u32 %v519_v36, 3  ;;  %v513_v39 = vadd.s32 24, %v2546_v34  ;;  %v1988_v42 = vld [vmem:[%s475_s21] ss:$0 sm:$0xff] }
  0x10   : > { %486 = vadd.xlane.f32.xlu0 %v485_v1  ;;  %v514_v40 = vshrl.u32 %v2546_v34, 3  ;;  %v512_v41 = vadd.s32 16, %v2546_v34  ;;  %v2306_v36 = vld [vmem:[%s2857_s5 + $0x8] sm:$0xff]  }
  0x11   : > { %2145 = vmatpush3.bf16.msra.mxu0 %v2305_v9  ;;  %v515_v37 = vshrl.u32 %v511_v35, 3  ;;  %v517_v43 = vshrl.u32 %v513_v39, 3 }
  0x12   : > { %vm521_vm4 = vcmp.eq.s32.totalorder %v514_v40, %v520_v38  ;;  %v516_v44 = vshrl.u32 %v512_v41, 3 }
  0x13   : > { %vm522_vm3 = vcmp.eq.s32.totalorder %v515_v37, %v520_v38  ;;  %vm524_vm5 = vcmp.eq.s32.totalorder %v517_v43, %v520_v38  ;;  %v2558_v47 = vsel %vm521_vm4, %v1988_v42, -1e+09 }
  0x14   : > { %v2556_v45 = vsel %vm522_vm3, %v1988_v42, -1e+09  ;;  %vm523_vm6 = vcmp.eq.s32.totalorder %v516_v44, %v520_v38  ;;  %v2561_v50 = vsel %vm524_vm5, %v1988_v42, -1e+09  ;;  %v2307_v38 = vld [vmem:[%s2857_s5] sm:$0xff]  }
  0x15   : > { %v2565_v54 = vsel %vm523_vm6, %v1988_v42, -1e+09 }
  0x99   : > { %v487_v2 = vpop.xlane.xlu0 %486 }
  0x9a   : > { %v489_v3 = vmul.f32 0.03125, %v487_v2 }
  0x9c   : > { %v490_v4 = vsub.f32 %v481_v0, %v489_v3 }
  0x9e   : > { %v491_v5 = vmul.f32 %v490_v4, %v490_v4 }
  0xa0   : > { %v492_v6 = vsel %vm484_vm0, %v491_v5, 0.0 }
  0xa1   : > { %493 = vadd.xlane.f32.xlu0 %v492_v6 }
 0x12a   : > { %v494_v10 = vpop.xlane.xlu0 %493 }
 0x12b   : > { %v495_v11 = vmul.f32 0.03125, %v494_v10 }
 0x12d   : > { %v496_v12 = vadd.f32 1e-12, %v495_v11 }
 0x12f   : > { %2328 = vrsqrt.f32 %v496_v12 }
 0x13c   : > { %v2329_v13 = vpop.eup %2328 }
 0x13d   : > { %v498_v15 = vmul.f32 %v2329_v13, %v490_v4 }
 0x13f   : > { %v503_v17 = vmul.f32 %v1986_v14, %v498_v15 }
 0x141   : > { %v2501_v18 = vadd.f32 %v1987_v16, %v503_v17 }
 0x143   : > { %v557_v19 = vpack.c.bf16 %v2501_v18, %v2501_v18 }
 0x145   : > { %2147 = vmatmul.mubr.msk.bf16.vlgmr.msra.gmra.mxu0 %vm484_vm0, %v557_v19 }
 0x205   : > { %v613_v21 = vpop.f32.mrf.mxu0 }
 0x206   : > { %v2509_v22 = vadd.f32 %v1989_v20, %v613_v21 }
 0x207   : > { %v2148_v23 = vpop.f32.mrf.mxu0 }
 0x208   : > { %620 = vrot.lane.b32.xlu0 %v2509_v22, %s2386_s30  ;;  %624 = vrot.lane.b32.xlu1 %v2509_v22, %s2387_s16 }
 0x209   : > { %2158 = vmatprep.mubr.msk.f32.mxu1 %vm634_vm2, %v2509_v22  ;;  %v616_v24 = vpop.f32.mrf.mxu0 }
 0x20b   : > { %v2149_v25 = vpop.f32.mrf.mxu0 }
 0x20c   : > { %622 = vrot.lane.b32.xlu1 %v2509_v22, %s2388_s17 }
 0x27a   : > { %v625_v26 = vpop.permute.xlu1 %624  ;;  %v2524_v28 = vpop.permute.xlu0 %620 }
 0x27b   : > { %632 = vrot.lane.b32.xlu1 %v625_v26, %s2389_s18 }
 0x27e   : > { %v2520_v27 = vpop.permute.xlu1 %622 }
 0x27f   : > { %630 = vrot.lane.b32.xlu1 %v2520_v27, %s2389_s18 }
 0x283   : > { %628 = vrot.lane.b32.xlu1 %v2524_v28, %s2389_s18 }
 0x287   : > { %626 = vrot.lane.b32.xlu1 %v2509_v22, %s2389_s18 }
 0x2ed   : > { %v633_v29 = vpop.permute.xlu1 %632 }
 0x2ee   : > { %2150 = vmatprep.subr.msk.mxu1 %vm634_vm2, %v633_v29 }
 0x2ef   : > { %2151 = vmatpush3.xpose.msk.msra.mxu1 %vm634_vm2, %v633_v29 }
 0x2f1   : > { %v631_v30 = vpop.permute.xlu1 %630 }
 0x2f2   : > { %2152 = vmatprep.subr.msk.mxu1 %vm634_vm2, %v631_v30 }
 0x2f3   : > { %2153 = vmatpush3.xpose.msk.msra.mxu1 %vm634_vm2, %v631_v30 }
 0x2f5   : > { %v629_v31 = vpop.permute.xlu1 %628 }
 0x2f6   : > { %2154 = vmatprep.subr.msk.mxu1 %vm634_vm2, %v629_v31 }
 0x2f7   : > { %2155 = vmatpush3.xpose.msk.msra.mxu1 %vm634_vm2, %v629_v31 }
 0x2f9   : > { %v627_v32 = vpop.permute.xlu1 %626 }
 0x2fa   : > { %2156 = vmatprep.subr.msk.mxu1 %vm634_vm2, %v627_v32 }
 0x2fb   : > { %2157 = vmatpush3.xpose.msk.msra.mxu1 %vm634_vm2, %v627_v32 }
 0x2fc   : > { %2186 = vmatprep.subr.bf16.mxu1 %v2384_v8 }
 0x2fe   : > { %2159 = vmatmul.mubr.msk.f32.vlgmr.msra.gmra.mxu1 %vm634_vm2, %v2524_v28 }
 0x2ff   : > { %2161 = vmatprep.mubr.msk.f32.mxu1 %vm634_vm2, %v2520_v27 }
 0x302   : > { %2162 = vmatmul.mubr.msk.f32.gmra.mxu1 %vm634_vm2, %v625_v26 }
 0x303   : > { %2190 = vmatprep.mubr.msk.bf16.mxu1 %vm2385_vm1, %v2384_v8 }
 0x3be   : > { %v2160_v46 = vpop.f32.mrf.mxu1 }
 0x3bf   : > { %v723_v48 = vadd.f32 %v2160_v46, %v2556_v45 }
 0x3c0   : > { %v717_v49 = vpop.f32.mrf.mxu1 }
 0x3c1   : > { %v718_v51 = vadd.f32 %v717_v49, %v2558_v47  ;;  %v739_v52 = vsel %vm484_vm0, %v723_v48, -inf }
 0x3c2   : > { %740 = vmax.xlane.f32.xlu0 %v739_v52  ;;  %v2163_v53 = vpop.f32.mrf.mxu1  ;;  %v2608_v52 = vsub.s32 0, %v2546_v34 }
 0x3c3   : > { %v733_v55 = vadd.f32 %v2163_v53, %v2561_v50  ;;  %v736_v56 = vsel %vm484_vm0, %v718_v51, -inf  ;;  %v2613_v53 = vld [vmem:[%s2860_s8] sm:$0xff] }
 0x3c4   : > { %v727_v57 = vpop.f32.mrf.mxu1  ;;  %737 = vmax.xlane.f32.xlu1 %v736_v56 }
 0x3c5   : > { %v728_v58 = vadd.f32 %v727_v57, %v2565_v54  ;;  %v745_v59 = vsel %vm484_vm0, %v733_v55, -inf }
 0x3c6   : > { %746 = vmax.xlane.f32.xlu0 %v745_v59 }
 0x3c7   : > { %v742_v60 = vsel %vm484_vm0, %v728_v58, -inf }
 0x3c8   : > { %743 = vmax.xlane.f32.xlu1 %v742_v60 }
 0x3d9   : > { %786 = vrot.lane.b32.xlu1 %v625_v26, %s2390_s22 }
 0x44b   : > { %v741_v61 = vpop.xlane.xlu0 %740 }
 0x44c   : > { %v749_v62 = vsub.f32 %v723_v48, %v741_v61 }
 0x44d   : > { %v738_v63 = vpop.xlane.xlu1 %737 }
 0x44e   : > { %v754_v0 = vmul.f32 1.442695, %v749_v62  ;;  %v748_v1 = vsub.f32 %v718_v51, %v738_v63 }
 0x44f   : > { %v747_v2 = vpop.xlane.xlu0 %746 }
 0x450   : > { %2330 = vpow2.f32 %v754_v0  ;;  %v752_v3 = vmul.f32 1.442695, %v748_v1  ;;  %v751_v4 = vsub.f32 %v733_v55, %v747_v2  ;;  %v910_v55 = vrot.slane %v2613_v53, %v2608_v52 }
 0x451   : > { %v744_v5 = vpop.xlane.xlu1 %743 }
 0x452   : > { %2332 = vpow2.f32 %v752_v3  ;;  %v758_v6 = vmul.f32 1.442695, %v751_v4  ;;  %v750_v15 = vsub.f32 %v728_v58, %v744_v5  ;;  %v2308_v4 = vld [vmem:[%s2858_s6 + $0x8] sm:$0xff]  }
 0x453   : > { %2187 = vmatpush3.bf16.msra.mxu1 %v2308_v4 }
 0x454   : > { %2334 = vpow2.f32 %v758_v6  ;;  %v756_v16 = vmul.f32 1.442695, %v750_v15  ;;  %2188 = vmatprep.subr.bf16.mxu1 %v2384_v8 }
 0x455   : > { %v787_v7 = vpop.permute.xlu1 %786 }
 0x456   : > { %2164 = vmatprep.subr.mxu0 %v787_v7  ;;  %2336 = vpow2.f32 %v756_v16 }
 0x457   : > { %2165 = vmatpush3.msra.mxu0 %v787_v7 }
 0x45d   : > { %v2331_v9 = vpop.eup %2330 }
 0x45e   : > { %v763_v10 = vsel %vm484_vm0, %v2331_v9, 0.0 }
 0x45f   : > { %v2333_v11 = vpop.eup %2332  ;;  %764 = vadd.xlane.f32.xlu0 %v763_v10  ;;  %v987_v10 = vsub.s32 2, %v2546_v34 }
 0x460   : > { %v760_v12 = vsel %vm484_vm0, %v2333_v11, 0.0 }
 0x461   : > { %v2335_v13 = vpop.eup %2334  ;;  %761 = vadd.xlane.f32.xlu1 %v760_v12 }
 0x462   : > { %v769_v14 = vsel %vm484_vm0, %v2335_v13, 0.0 }
 0x463   : > { %770 = vadd.xlane.f32.xlu0 %v769_v14  ;;  %v2337_v17 = vpop.eup %2336 }
 0x464   : > { %v766_v19 = vsel %vm484_vm0, %v2337_v17, 0.0 }
 0x472   : > { %782 = vrot.lane.b32.xlu1 %v2524_v28, %s2390_s22 }
 0x479   : > { %784 = vrot.lane.b32.xlu0 %v2520_v27, %s2390_s22 }
 0x496   : > { %767 = vadd.xlane.f32.xlu1 %v766_v19  ;;  %v2310_v19 = vld [vmem:[%s2859_s7 + $0x18] sm:$0xff]  }
 0x4a7   : > { %780 = vrot.lane.b32.xlu1 %v2509_v22, %s2390_s22 }
 0x4e8   : > { %v765_v20 = vpop.xlane.xlu0 %764 }
 0x4ea   : > { %v762_v21 = vpop.xlane.xlu1 %761 }
 0x4eb   : > { %2338 = vrcp.f32 %v762_v21  ;;  %v2312_v21 = vld [vmem:[%s2859_s7 + $0x8] sm:$0xff]  }
 0x4ec   : > { %v771_v23 = vpop.xlane.xlu0 %770  ;;  %2340 = vrcp.f32 %v765_v20  ;;  %v2311_v20 = vld [vmem:[%s2859_s7 + $0x10] sm:$0xff]  }
 0x4ed   : > { %2342 = vrcp.f32 %v771_v23  ;;  %v2313_v23 = vld [vmem:[%s2859_s7] sm:$0xff]  }
 0x4ee   : > { %v783_v25 = vpop.permute.xlu1 %782 }
 0x4f0   : > { %v785_v24 = vpop.permute.xlu0 %784 }
 0x4f1   : > { %2166 = vmatprep.subr.mxu0 %v785_v24 }
 0x4f2   : > { %2167 = vmatpush3.msra.mxu0 %v785_v24  ;;  %v2008_v24 = vld [vmem:[%s2861_s9] ss:$0 sm:$0xff] }
 0x4f3   : > { %2168 = vmatprep.subr.mxu0 %v783_v25 }
 0x4f4   : > { %2169 = vmatpush3.msra.mxu0 %v783_v25 }
 0x4f8   : > { %v2339_v26 = vpop.eup %2338 }
 0x4f9   : > { %v776_v27 = vmul.f32 %v2339_v26, %v2333_v11  ;;  %v2341_v29 = vpop.eup %2340 }
 0x4fa   : > { %v777_v30 = vmul.f32 %v2341_v29, %v2331_v9  ;;  %v2343_v31 = vpop.eup %2342  ;;  %v982_v9 = vsub.s32 1, %v2546_v34 }
 0x4fb   : > { %2172 = vmatprep.mubr.msk.f32.mxu0 %vm484_vm0, %v776_v27  ;;  %v779_v35 = vmul.f32 %v2343_v31, %v2335_v13  ;;  %v988_v13 = vrot.slane %v2613_v53, %v987_v10 }
 0x4fc   : > { %v983_v11 = vrot.slane %v2613_v53, %v982_v9 }
 0x51f   : > { %v768_v28 = vpop.xlane.xlu1 %767 }
 0x520   : > { %2344 = vrcp.f32 %v768_v28 }
 0x523   : > { %v781_v22 = vpop.permute.xlu1 %780 }
 0x524   : > { %2170 = vmatprep.subr.mxu0 %v781_v22 }
 0x525   : > { %2171 = vmatpush3.msra.mxu0 %v781_v22 }
 0x526   : > { %2173 = vmatmul.mubr.msk.f32.vlgmr.msra.gmra.mxu0 %vm484_vm0, %v777_v30  ;;  %2178 = vmatprep.subr.bf16.mxu0 %v2384_v8 }
 0x527   : > { %2179 = vmatpush3.bf16.msra.mxu0 %v2306_v36 }
 0x528   : > { %2180 = vmatprep.subr.bf16.mxu0 %v2384_v8 }
 0x52b   : > { %2181 = vmatpush3.bf16.msra.mxu0 %v2307_v38 }
 0x52c   : > { %2194 = vmatprep.subr.bf16.mxu0 %v2384_v8 }
 0x52d   : > { %v2345_v32 = vpop.eup %2344 }
 0x52e   : > { %v778_v33 = vmul.f32 %v2345_v32, %v2337_v17 }
 0x530   : > { %2175 = vmatprep.mubr.msk.f32.mxu0 %vm484_vm0, %v778_v33 }
 0x531   : > { %2176 = vmatmul.mubr.msk.f32.gmra.mxu0 %vm484_vm0, %v779_v35 }
 0x532   : > { %2182 = vmatprep.mubr.msk.bf16.mxu0 %vm2385_vm1, %v2384_v8 }
 0x5e6   : > { %v2174_v37 = vpop.f32.mrf.mxu0 }
 0x5e7   : > { %890 = vrot.lane.b32.xlu0 %v2174_v37, %s2391_s25 }
 0x5e8   : > { %v870_v39 = vpop.f32.mrf.mxu0 }
 0x5f1   : > { %v2177_v40 = vpop.f32.mrf.mxu0 }
 0x5f2   : > { %898 = vrot.lane.b32.xlu0 %v2177_v40, %s2868_s28  ;;  %v1064_v40 = vsub.s32 3, %v2546_v34  ;;  %s479_s28 = scalar_lea.vmem %s2866_s14, %s2477_s15 }
 0x5f3   : > { %v880_v41 = vpop.f32.mrf.mxu0 }
 0x5f4   : > { %894 = vrot.lane.b32.xlu1 %v880_v41, %s2867_s19  ;;  %v1065_v41 = vrot.slane %v2613_v53, %v1064_v40 }
 0x659   : > { %v891_v42 = vpop.permute.xlu0 %890 }
 0x65a   : > { %v901_v43 = vsel %vm634_vm2, %v870_v39, %v891_v42 }
 0x664   : > { %v899_v46 = vpop.permute.xlu0 %898 }
 0x666   : > { %v895_v44 = vpop.permute.xlu1 %894 }
 0x667   : > { %v903_v48 = vsel %vm902_vm7, %v901_v43, %v895_v44 }
 0x668   : > { %v905_v49 = vsel %vm904_vm8, %v903_v48, %v899_v46 }
 0x669   : > { %v906_v51 = vpack.c.bf16 %v905_v49, %v905_v49 }
 0x66b   : > { %2183 = vmatmul.mubr.msk.bf16.vlgmr.msra.gmra.mxu0 %vm484_vm0, %v906_v51 }
 0x66c   : > { %2202 = vmatprep.mubr.msk.bf16.mxu0 %vm2385_vm1, %v2384_v8  ;;  %2195 = vmatpush3.bf16.msra.mxu0 %v2310_v19 }
 0x66d   : > { %2196 = vmatprep.subr.bf16.mxu0 %v2384_v8 }
 0x670   : > { %2197 = vmatpush3.bf16.msra.mxu0 %v2311_v20 }
 0x671   : > { %2198 = vmatprep.subr.bf16.mxu0 %v2384_v8 }
 0x674   : > { %2199 = vmatpush3.bf16.msra.mxu0 %v2312_v21 }
 0x675   : > { %2200 = vmatprep.subr.bf16.mxu0 %v2384_v8 }
 0x678   : > { %2201 = vmatpush3.bf16.msra.mxu0 %v2313_v23 }
 0x72b   : > { %v960_v56 = vpop.f32.mrf.mxu0 }
 0x72c   : > { %v961_v57 = vadd.f32 %v960_v56, %v910_v55 }
 0x72d   : > { %v2184_v58 = vpop.f32.mrf.mxu0 }
 0x72e   : > { %v966_v59 = vadd.f32 %v961_v57, %v2501_v18  ;;  %v2309_v18 = vld [vmem:[%s2858_s6] sm:$0xff]  }
 0x72f   : > { %v963_v60 = vpop.f32.mrf.mxu0  ;;  %2189 = vmatpush3.bf16.msra.mxu1 %v2309_v18 }
 0x730   : > { %v967_v61 = vsel %vm484_vm0, %v966_v59, 0.0  ;;  %2206 = vmatprep.subr.bf16.mxu1 %v2384_v8  ;;  %v2314_v60 = vld [vmem:[%s2855_s3 + $0x18] sm:$0xff]  }
 0x731   : > { %968 = vadd.xlane.f32.xlu1 %v967_v61  ;;  %v2185_v62 = vpop.f32.mrf.mxu0  ;;  %v2315_v61 = vld [vmem:[%s2855_s3 + $0x10] sm:$0xff]  }
 0x7ba   : > { %v969_v63 = vpop.xlane.xlu1 %968 }
 0x7bb   : > { %v970_v0 = vmul.f32 0.03125, %v969_v63 }
 0x7bd   : > { %v971_v1 = vsub.f32 %v966_v59, %v970_v0 }
 0x7bf   : > { %v972_v2 = vmul.f32 %v971_v1, %v971_v1 }
 0x7c1   : > { %v973_v3 = vsel %vm484_vm0, %v972_v2, 0.0  ;;  %v1155_v2 = vsub.s32 5, %v2546_v34 }
 0x7c2   : > { %974 = vadd.xlane.f32.xlu0 %v973_v3 }
 0x84b   : > { %v975_v5 = vpop.xlane.xlu0 %974 }
 0x84c   : > { %v976_v6 = vmul.f32 0.03125, %v975_v5  ;;  %v1156_v5 = vrot.slane %v2613_v53, %v1155_v2 }
 0x84e   : > { %v977_v7 = vadd.f32 1e-12, %v976_v6 }
 0x850   : > { %2346 = vrsqrt.f32 %v977_v7 }
 0x85d   : > { %v2347_v12 = vpop.eup %2346 }
 0x85e   : > { %v979_v14 = vmul.f32 %v2347_v12, %v971_v1  ;;  %v1150_v1 = vsub.s32 4, %v2546_v34  ;;  %v2040_v12 = vld [vmem:[%s2856_s4 + $0x1] ss:$0 sm:$0xff] }
 0x85f   : > { %v2327_v34 = vld [vmem:[%s2864_s12] sm:$0xff]  }
 0x860   : > { %v984_v15 = vmul.f32 %v983_v11, %v979_v14  ;;  %v1151_v3 = vrot.slane %v2613_v53, %v1150_v1 }
 0x862   : > { %v989_v16 = vadd.f32 %v988_v13, %v984_v15 }
 0x864   : > { %v990_v17 = vpack.c.bf16 %v989_v16, %v989_v16 }
 0x866   : > { %2191 = vmatmul.mubr.msk.bf16.vlgmr.msra.gmra.mxu1 %vm484_vm0, %v990_v17 }
 0x867   : > { %2210 = vmatprep.mubr.msk.bf16.mxu1 %vm2385_vm1, %v2384_v8  ;;  %2207 = vmatpush3.bf16.msra.mxu1 %v2314_v60 }
 0x868   : > { %2208 = vmatprep.subr.bf16.mxu1 %v2384_v8 }
 0x86b   : > { %2209 = vmatpush3.bf16.msra.mxu1 %v2315_v61 }
 0x926   : > { %v1046_v25 = vpop.f32.mrf.mxu1 }
 0x927   : > { %v1047_v26 = vadd.f32 %v2008_v24, %v1046_v25 }
 0x928   : > { %v2192_v27 = vpop.f32.mrf.mxu1 }
 0x929   : > { %v1053_v28 = vmul.f32 0.044715, %v1047_v26  ;;  %v1052_v36 = vmul.f32 0.5, %v1047_v26 }
 0x92a   : > { %v1049_v29 = vpop.f32.mrf.mxu1 }
 0x92b   : > { %v1054_v22 = vmul.f32 %v1053_v28, %v1047_v26 }
 0x92c   : > { %v2193_v30 = vpop.f32.mrf.mxu1 }
 0x92d   : > { %v1055_v31 = vmul.f32 %v1054_v22, %v1047_v26 }
 0x92f   : > { %v1056_v32 = vadd.f32 %v1055_v31, %v1047_v26 }
 0x931   : > { %v1057_v33 = vmul.f32 0.7978846, %v1056_v32 }
 0x933   : > { %2348 = vtanh.f32 %v1057_v33 }
 0x940   : > { %v2349_v35 = vpop.eup %2348 }
 0x941   : > { %v1059_v37 = vadd.f32 1.0, %v2349_v35 }
 0x943   : > { %v1060_v38 = vmul.f32 %v1059_v37, %v1052_v36 }
 0x945   : > { %v1061_v39 = vpack.c.bf16 %v1060_v38, %v1060_v38 }
 0x947   : > { %2203 = vmatmul.mubr.msk.bf16.vlgmr.msra.gmra.mxu0 %vm1090_vm9, %v1061_v39 }
 0xa07   : > { %v1128_v42 = vpop.f32.mrf.mxu0 }
 0xa08   : > { %v1129_v43 = vadd.f32 %v1128_v42, %v1065_v41 }
 0xa09   : > { %v2204_v44 = vpop.f32.mrf.mxu0 }
 0xa0a   : > { %v1134_v46 = vadd.f32 %v1129_v43, %v989_v16 }
 0xa0b   : > { %v1131_v48 = vpop.f32.mrf.mxu0 }
 0xa0c   : > { %v1135_v49 = vsel %vm484_vm0, %v1134_v46, 0.0 }
 0xa0d   : > { %1136 = vadd.xlane.f32.xlu0 %v1135_v49  ;;  %v2205_v51 = vpop.f32.mrf.mxu0 }
 0xa96   : > { %v1137_v55 = vpop.xlane.xlu0 %1136 }
 0xa97   : > { %v1138_v56 = vmul.f32 0.03125, %v1137_v55 }
 0xa99   : > { %v1139_v57 = vsub.f32 %v1134_v46, %v1138_v56 }
 0xa9b   : > { %v1140_v58 = vmul.f32 %v1139_v57, %v1139_v57 }
 0xa9d   : > { %v1141_v59 = vsel %vm484_vm0, %v1140_v58, 0.0 }
 0xa9e   : > { %1142 = vadd.xlane.f32.xlu1 %v1141_v59 }
 0xb27   : > { %v1143_v62 = vpop.xlane.xlu1 %1142 }
 0xb28   : > { %v1144_v63 = vmul.f32 0.03125, %v1143_v62 }
 0xb2a   : > { %v1145_v0 = vadd.f32 1e-12, %v1144_v63 }
 0xb2c   : > { %2350 = vrsqrt.f32 %v1145_v0 }
 0xb39   : > { %v2351_v4 = vpop.eup %2350 }
 0xb3a   : > { %v1147_v18 = vmul.f32 %v2351_v4, %v1139_v57 }
 0xb3c   : > { %v1152_v6 = vmul.f32 %v1151_v3, %v1147_v18 }
 0xb3e   : > { %v2679_v7 = vadd.f32 %v1156_v5, %v1152_v6 }
 0xb40   : > { %v1188_v11 = vpack.c.bf16 %v2679_v7, %v2679_v7 }
 0xb42   : > { %2211 = vmatmul.mubr.msk.bf16.vlgmr.msra.gmra.mxu1 %vm484_vm0, %v1188_v11 }
 0xc02   : > { %v1244_v13 = vpop.f32.mrf.mxu1 }
 0xc03   : > { %v2687_v14 = vadd.f32 %v2040_v12, %v1244_v13 }
 0xc04   : > { %v2212_v15 = vpop.f32.mrf.mxu1 }
 0xc05   : > { %1253 = vrot.lane.b32.xlu1 %v2687_v14, %s2388_s17  ;;  %1255 = vrot.lane.b32.xlu0 %v2687_v14, %s2387_s16 }
 0xc06   : > { %2222 = vmatprep.mubr.msk.f32.mxu1 %vm634_vm2, %v2687_v14  ;;  %v1247_v53 = vpop.f32.mrf.mxu1 }
 0xc08   : > { %v2213_v16 = vpop.f32.mrf.mxu1 }
 0xc09   : > { %1251 = vrot.lane.b32.xlu1 %v2687_v14, %s2386_s30 }
 0xc77   : > { %v2697_v17 = vpop.permute.xlu1 %1253  ;;  %v1256_v19 = vpop.permute.xlu0 %1255 }
 0xc78   : > { %1261 = vrot.lane.b32.xlu1 %v2697_v17, %s2389_s18  ;;  %1263 = vrot.lane.b32.xlu0 %v1256_v19, %s2389_s18 }
 0xc7b   : > { %v1252_v20 = vpop.permute.xlu1 %1251 }
 0xc7c   : > { %1257 = vrot.lane.b32.xlu1 %v2687_v14, %s2389_s18  ;;  %1259 = vrot.lane.b32.xlu0 %v1252_v20, %s2389_s18 }
 0xcea   : > { %v1264_v21 = vpop.permute.xlu0 %1263  ;;  %v1262_v23 = vpop.permute.xlu1 %1261 }
 0xceb   : > { %2214 = vmatprep.subr.msk.mxu1 %vm634_vm2, %v1264_v21 }
 0xcec   : > { %2215 = vmatpush3.xpose.msk.msra.mxu1 %vm634_vm2, %v1264_v21 }
 0xced   : > { %2216 = vmatprep.subr.msk.mxu1 %vm634_vm2, %v1262_v23 }
 0xcee   : > { %v1260_v24 = vpop.permute.xlu0 %1259  ;;  %v1258_v25 = vpop.permute.xlu1 %1257 }
 0xcf0   : > { %2217 = vmatpush3.xpose.msk.msra.mxu1 %vm634_vm2, %v1262_v23 }
 0xcf1   : > { %2218 = vmatprep.subr.msk.mxu1 %vm634_vm2, %v1260_v24 }
 0xcf4   : > { %2219 = vmatpush3.xpose.msk.msra.mxu1 %vm634_vm2, %v1260_v24 }
 0xcf5   : > { %2220 = vmatprep.subr.msk.mxu1 %vm634_vm2, %v1258_v25 }
 0xcf8   : > { %2221 = vmatpush3.xpose.msk.msra.mxu1 %vm634_vm2, %v1258_v25 }
 0xcf9   : > { %2250 = vmatprep.subr.bf16.mxu1 %v2384_v8 }
 0xcfb   : > { %2223 = vmatmul.mubr.msk.f32.vlgmr.msra.gmra.mxu1 %vm634_vm2, %v1252_v20 }
 0xcfc   : > { %2225 = vmatprep.mubr.msk.f32.mxu1 %vm634_vm2, %v2697_v17 }
 0xcff   : > { %2226 = vmatmul.mubr.msk.f32.gmra.mxu1 %vm634_vm2, %v1256_v19 }
 0xd00   : > { %2254 = vmatprep.mubr.msk.bf16.mxu1 %vm2385_vm1, %v2384_v8 }
 0xdbb   : > { %v2224_v26 = vpop.f32.mrf.mxu1 }
 0xdbc   : > { %v1353_v27 = vadd.f32 %v2224_v26, %v2556_v45 }
 0xdbd   : > { %v1347_v28 = vpop.f32.mrf.mxu1 }
 0xdbe   : > { %v1348_v29 = vadd.f32 %v1347_v28, %v2558_v47  ;;  %v1369_v22 = vsel %vm484_vm0, %v1353_v27, -inf }
 0xdbf   : > { %1370 = vmax.xlane.f32.xlu1 %v1369_v22  ;;  %v2227_v30 = vpop.f32.mrf.mxu1 }
 0xdc0   : > { %v1366_v31 = vsel %vm484_vm0, %v1348_v29, -inf  ;;  %v1363_v35 = vadd.f32 %v2227_v30, %v2561_v50 }
 0xdc1   : > { %v1357_v32 = vpop.f32.mrf.mxu1  ;;  %1367 = vmax.xlane.f32.xlu0 %v1366_v31  ;;  %v2765_v31 = vld [vmem:[%s2860_s8 + $0x8] sm:$0xff] }
 0xdc2   : > { %v1358_v33 = vadd.f32 %v1357_v32, %v2565_v54  ;;  %v1375_v45 = vsel %vm484_vm0, %v1363_v35, -inf  ;;  %v1538_v32 = vrot.slane %v2765_v31, %v2608_v52 }
 0xdc4   : > { %v1372_v36 = vsel %vm484_vm0, %v1358_v33, -inf }
 0xdc5   : > { %1373 = vmax.xlane.f32.xlu0 %v1372_v36 }
 0xdc9   : > { %1376 = vmax.xlane.f32.xlu0 %v1375_v45 }
 0xdd0   : > { %1416 = vrot.lane.b32.xlu1 %v1256_v19, %s2390_s22 }
 0xe48   : > { %v1371_v47 = vpop.xlane.xlu1 %1370 }
 0xe49   : > { %v1379_v37 = vsub.f32 %v1353_v27, %v1371_v47 }
 0xe4a   : > { %v1368_v38 = vpop.xlane.xlu0 %1367 }
 0xe4b   : > { %v1384_v39 = vmul.f32 1.442695, %v1379_v37  ;;  %v1378_v41 = vsub.f32 %v1348_v29, %v1368_v38 }
 0xe4c   : > { %v1417_v42 = vpop.permute.xlu1 %1416 }
 0xe4d   : > { %2352 = vpow2.f32 %v1384_v39  ;;  %v1382_v43 = vmul.f32 1.442695, %v1378_v41  ;;  %2228 = vmatprep.subr.mxu0 %v1417_v42 }
 0xe4e   : > { %2229 = vmatpush3.msra.mxu0 %v1417_v42  ;;  %v1374_v54 = vpop.xlane.xlu0 %1373 }
 0xe4f   : > { %2354 = vpow2.f32 %v1382_v43  ;;  %v1380_v58 = vsub.f32 %v1358_v33, %v1374_v54 }
 0xe51   : > { %v1386_v59 = vmul.f32 1.442695, %v1380_v58 }
 0xe52   : > { %v1377_v50 = vpop.xlane.xlu0 %1376 }
 0xe53   : > { %v1381_v44 = vsub.f32 %v1363_v35, %v1377_v50  ;;  %v2318_v50 = vld [vmem:[%s2858_s6 + $0x18] sm:$0xff]  }
 0xe54   : > { %2251 = vmatpush3.bf16.msra.mxu1 %v2318_v50 }
 0xe55   : > { %v1388_v46 = vmul.f32 1.442695, %v1381_v44  ;;  %2252 = vmatprep.subr.bf16.mxu1 %v2384_v8 }
 0xe57   : > { %2356 = vpow2.f32 %v1388_v46 }
 0xe58   : > { %2358 = vpow2.f32 %v1386_v59 }
 0xe5a   : > { %v2353_v48 = vpop.eup %2352 }
 0xe5b   : > { %v1393_v49 = vsel %vm484_vm0, %v2353_v48, 0.0 }
 0xe5c   : > { %v2355_v51 = vpop.eup %2354  ;;  %1394 = vadd.xlane.f32.xlu0 %v1393_v49  ;;  %v1611_v49 = vrot.slane %v2765_v31, %v982_v9  ;;  %v2321_v9 = vld [vmem:[%s2859_s7 + $0x30] sm:$0xff]  }
 0xe5d   : > { %v1390_v55 = vsel %vm484_vm0, %v2355_v51, 0.0 }
 0xe5e   : > { %1391 = vadd.xlane.f32.xlu1 %v1390_v55  ;;  %v1616_v55 = vrot.slane %v2765_v31, %v987_v10  ;;  %v2322_v10 = vld [vmem:[%s2859_s7 + $0x28] sm:$0xff]  }
 0xe64   : > { %v2357_v56 = vpop.eup %2356 }
 0xe65   : > { %v1399_v57 = vsel %vm484_vm0, %v2357_v56, 0.0  ;;  %v2359_v60 = vpop.eup %2358 }
 0xe66   : > { %1400 = vadd.xlane.f32.xlu0 %v1399_v57  ;;  %v1396_v61 = vsel %vm484_vm0, %v2359_v60, 0.0 }
 0xe6f   : > { %1412 = vrot.lane.b32.xlu1 %v1252_v20, %s2390_s22  ;;  %v2317_v20 = vld [vmem:[%s2857_s5 + $0x10] sm:$0xff]  }
 0xe7c   : > { %1414 = vrot.lane.b32.xlu0 %v2697_v17, %s2390_s22  ;;  %v2316_v17 = vld [vmem:[%s2857_s5 + $0x18] sm:$0xff]  }
 0xe93   : > { %1397 = vadd.xlane.f32.xlu1 %v1396_v61  ;;  %v2323_v61 = vld [vmem:[%s2859_s7 + $0x20] sm:$0xff]  }
 0xea4   : > { %1410 = vrot.lane.b32.xlu1 %v2687_v14, %s2390_s22  ;;  %s2869_s22 = smov 24  }
 0xee5   : > { %v1395_v63 = vpop.xlane.xlu0 %1394 }
 0xee7   : > { %v1392_v62 = vpop.xlane.xlu1 %1391 }
 0xee8   : > { %2360 = vrcp.f32 %v1392_v62  ;;  %v2059_v62 = vld [vmem:[%s2861_s9 + $0x1] ss:$0 sm:$0xff] }
 0xee9   : > { %2362 = vrcp.f32 %v1395_v63 }
 0xeeb   : > { %v1413_v18 = vpop.permute.xlu1 %1412 }
 0xeef   : > { %v1401_v0 = vpop.xlane.xlu0 %1400 }
 0xef0   : > { %2364 = vrcp.f32 %v1401_v0 }
 0xef3   : > { %v1415_v3 = vpop.permute.xlu0 %1414 }
 0xef4   : > { %2230 = vmatprep.subr.mxu0 %v1415_v3 }
 0xef5   : > { %v2361_v4 = vpop.eup %2360  ;;  %2231 = vmatpush3.msra.mxu0 %v1415_v3 }
 0xef6   : > { %2232 = vmatprep.subr.mxu0 %v1413_v18  ;;  %v1406_v5 = vmul.f32 %v2361_v4, %v2355_v51  ;;  %v2363_v11 = vpop.eup %2362 }
 0xef7   : > { %2233 = vmatpush3.msra.mxu0 %v1413_v18  ;;  %v1407_v13 = vmul.f32 %v2363_v11, %v2353_v48 }
 0xef8   : > { %2236 = vmatprep.mubr.msk.f32.mxu0 %vm484_vm0, %v1406_v5 }
 0xefd   : > { %v2365_v14 = vpop.eup %2364 }
 0xefe   : > { %v1409_v16 = vmul.f32 %v2365_v14, %v2357_v56 }
 0xf1c   : > { %v1398_v6 = vpop.xlane.xlu1 %1397 }
 0xf1d   : > { %2366 = vrcp.f32 %v1398_v6 }
 0xf20   : > { %v1411_v12 = vpop.permute.xlu1 %1410 }
 0xf21   : > { %2234 = vmatprep.subr.mxu0 %v1411_v12 }
 0xf22   : > { %2235 = vmatpush3.msra.mxu0 %v1411_v12 }
 0xf23   : > { %2237 = vmatmul.mubr.msk.f32.vlgmr.msra.gmra.mxu0 %vm484_vm0, %v1407_v13  ;;  %2242 = vmatprep.subr.bf16.mxu0 %v2384_v8 }
 0xf24   : > { %2243 = vmatpush3.bf16.msra.mxu0 %v2316_v17 }
 0xf25   : > { %2244 = vmatprep.subr.bf16.mxu0 %v2384_v8 }
 0xf28   : > { %2245 = vmatpush3.bf16.msra.mxu0 %v2317_v20 }
 0xf29   : > { %2258 = vmatprep.subr.bf16.mxu0 %v2384_v8 }
 0xf2a   : > { %v2367_v15 = vpop.eup %2366 }
 0xf2b   : > { %v1408_v53 = vmul.f32 %v2367_v15, %v2359_v60  ;;  %v2320_v60 = vld [vmem:[%s2859_s7 + $0x38] sm:$0xff]  }
 0xf2d   : > { %2239 = vmatprep.mubr.msk.f32.mxu0 %vm484_vm0, %v1408_v53 }
 0xf2e   : > { %2240 = vmatmul.mubr.msk.f32.gmra.mxu0 %vm484_vm0, %v1409_v16 }
 0xf2f   : > { %2246 = vmatprep.mubr.msk.bf16.mxu0 %vm2385_vm1, %v2384_v8 }
 0xfe3   : > { %v2238_v19 = vpop.f32.mrf.mxu0 }
 0xfe4   : > { %1520 = vrot.lane.b32.xlu0 %v2238_v19, %s2391_s25  ;;  %v1693_v19 = vrot.slane %v2765_v31, %v1064_v40  ;;  %v2324_v40 = vld [vmem:[%s2862_s10 + $0x8] sm:$0xff]  }
 0xfe5   : > { %v1500_v21 = vpop.f32.mrf.mxu0 }
 0xfee   : > { %v2241_v23 = vpop.f32.mrf.mxu0 }
 0xfef   : > { %1528 = vrot.lane.b32.xlu0 %v2241_v23, %s2869_s22 }
 0xff0   : > { %v1510_v24 = vpop.f32.mrf.mxu0 }
 0xff1   : > { %1524 = vrot.lane.b32.xlu1 %v1510_v24, %s2870_s20 }
0x1056   : > { %v1521_v25 = vpop.permute.xlu0 %1520 }
0x1057   : > { %v1531_v26 = vsel %vm634_vm2, %v1500_v21, %v1521_v25 }
0x1061   : > { %v1529_v28 = vpop.permute.xlu0 %1528 }
0x1063   : > { %v1525_v27 = vpop.permute.xlu1 %1524 }
0x1064   : > { %v1532_v29 = vsel %vm902_vm7, %v1531_v26, %v1525_v27 }
0x1065   : > { %v1533_v22 = vsel %vm904_vm8, %v1532_v29, %v1529_v28 }
0x1066   : > { %v1534_v30 = vpack.c.bf16 %v1533_v22, %v1533_v22 }
0x1068   : > { %2247 = vmatmul.mubr.msk.bf16.vlgmr.msra.gmra.mxu0 %vm484_vm0, %v1534_v30 }
0x1069   : > { %2266 = vmatprep.mubr.msk.bf16.mxu0 %vm2385_vm1, %v2384_v8  ;;  %2259 = vmatpush3.bf16.msra.mxu0 %v2320_v60 }
0x106a   : > { %2260 = vmatprep.subr.bf16.mxu0 %v2384_v8 }
0x106d   : > { %2261 = vmatpush3.bf16.msra.mxu0 %v2321_v9 }
0x106e   : > { %2262 = vmatprep.subr.bf16.mxu0 %v2384_v8 }
0x1071   : > { %2263 = vmatpush3.bf16.msra.mxu0 %v2322_v10 }
0x1072   : > { %2264 = vmatprep.subr.bf16.mxu0 %v2384_v8 }
0x1075   : > { %2265 = vmatpush3.bf16.msra.mxu0 %v2323_v61 }
0x1128   : > { %v1588_v33 = vpop.f32.mrf.mxu0 }
0x1129   : > { %v1589_v35 = vadd.f32 %v1588_v33, %v1538_v32  ;;  %v2325_v33 = vld [vmem:[%s2862_s10] sm:$0xff]  }
0x112a   : > { %v2248_v36 = vpop.f32.mrf.mxu0 }
0x112b   : > { %v1594_v45 = vadd.f32 %v1589_v35, %v2679_v7  ;;  %v2319_v7 = vld [vmem:[%s2858_s6 + $0x10] sm:$0xff]  }
0x112c   : > { %v1591_v47 = vpop.f32.mrf.mxu0  ;;  %2253 = vmatpush3.bf16.msra.mxu1 %v2319_v7 }
0x112d   : > { %v1595_v37 = vsel %vm484_vm0, %v1594_v45, 0.0  ;;  %2270 = vmatprep.subr.bf16.mxu1 %v2384_v8  ;;  %v1778_v47 = vrot.slane %v2765_v31, %v1150_v1  ;;  %v1790_v1 = vld [vmem:[%s2863_s11] sm:$0x1] }
0x112e   : > { %1596 = vadd.xlane.f32.xlu1 %v1595_v37  ;;  %v2249_v38 = vpop.f32.mrf.mxu0 }
0x11b7   : > { %v1597_v39 = vpop.xlane.xlu1 %1596 }
0x11b8   : > { %v1598_v41 = vmul.f32 0.03125, %v1597_v39  ;;  %v1783_v39 = vrot.slane %v2765_v31, %v1155_v2 }
0x11ba   : > { %v1599_v42 = vsub.f32 %v1594_v45, %v1598_v41 }
0x11bc   : > { %v1600_v43 = vmul.f32 %v1599_v42, %v1599_v42 }
0x11be   : > { %v1601_v54 = vsel %vm484_vm0, %v1600_v43, 0.0 }
0x11bf   : > { %1602 = vadd.xlane.f32.xlu0 %v1601_v54  ;;  %v2326_v54 = vld [vmem:[%s2864_s12 + $0x8] sm:$0xff]  }
0x1248   : > { %v1603_v44 = vpop.xlane.xlu0 %1602 }
0x1249   : > { %v1604_v46 = vmul.f32 0.03125, %v1603_v44 }
0x124b   : > { %v1605_v48 = vadd.f32 1e-12, %v1604_v46 }
0x124d   : > { %2368 = vrsqrt.f32 %v1605_v48 }
0x125a   : > { %v2369_v51 = vpop.eup %2368 }
0x125b   : > { %v1607_v56 = vmul.f32 %v2369_v51, %v1599_v42 }
0x125d   : > { %v1612_v57 = vmul.f32 %v1611_v49, %v1607_v56 }
0x125f   : > { %v1617_v58 = vadd.f32 %v1616_v55, %v1612_v57 }
0x1261   : > { %v1618_v59 = vpack.c.bf16 %v1617_v58, %v1617_v58 }
0x1263   : > { %2255 = vmatmul.mubr.msk.bf16.vlgmr.msra.gmra.mxu1 %vm484_vm0, %v1618_v59 }
0x1264   : > { %2274 = vmatprep.mubr.msk.bf16.mxu1 %vm2385_vm1, %v2384_v8  ;;  %2271 = vmatpush3.bf16.msra.mxu1 %v2324_v40 }
0x1265   : > { %2272 = vmatprep.subr.bf16.mxu1 %v2384_v8 }
0x1268   : > { %2273 = vmatpush3.bf16.msra.mxu1 %v2325_v33 }
0x1269   : > { %2278 = vmatprep.subr.bf16.mxu1 %v2384_v8 }
0x1323   : > { %v1674_v63 = vpop.f32.mrf.mxu1 }
0x1324   : > { %v1675_v0 = vadd.f32 %v2059_v62, %v1674_v63 }
0x1325   : > { %v2256_v3 = vpop.f32.mrf.mxu1 }
0x1326   : > { %v1681_v4 = vmul.f32 0.044715, %v1675_v0  ;;  %v1680_v15 = vmul.f32 0.5, %v1675_v0 }
0x1327   : > { %v1677_v18 = vpop.f32.mrf.mxu1 }
0x1328   : > { %v1682_v5 = vmul.f32 %v1681_v4, %v1675_v0 }
0x1329   : > { %v2257_v6 = vpop.f32.mrf.mxu1 }
0x132a   : > { %v1683_v11 = vmul.f32 %v1682_v5, %v1675_v0 }
0x132c   : > { %v1684_v12 = vadd.f32 %v1683_v11, %v1675_v0 }
0x132e   : > { %v1685_v13 = vmul.f32 0.7978846, %v1684_v12 }
0x1330   : > { %2370 = vtanh.f32 %v1685_v13 }
0x133d   : > { %v2371_v14 = vpop.eup %2370 }
0x133e   : > { %v1687_v53 = vadd.f32 1.0, %v2371_v14 }
0x1340   : > { %v1688_v16 = vmul.f32 %v1687_v53, %v1680_v15 }
0x1342   : > { %v1689_v17 = vpack.c.bf16 %v1688_v16, %v1688_v16 }
0x1344   : > { %2267 = vmatmul.mubr.msk.bf16.vlgmr.msra.gmra.mxu0 %vm1090_vm9, %v1689_v17 }
0x1404   : > { %v1755_v20 = vpop.f32.mrf.mxu0 }
0x1405   : > { %v1756_v21 = vadd.f32 %v1755_v20, %v1693_v19 }
0x1406   : > { %v2268_v23 = vpop.f32.mrf.mxu0 }
0x1407   : > { %v1761_v24 = vadd.f32 %v1756_v21, %v1617_v58 }
0x1408   : > { %v1758_v25 = vpop.f32.mrf.mxu0 }
0x1409   : > { %v1762_v26 = vsel %vm484_vm0, %v1761_v24, 0.0 }
0x140a   : > { %1763 = vadd.xlane.f32.xlu0 %v1762_v26  ;;  %v2269_v27 = vpop.f32.mrf.mxu0 }
0x1493   : > { %v1764_v28 = vpop.xlane.xlu0 %1763 }
0x1494   : > { %v1765_v29 = vmul.f32 0.03125, %v1764_v28 }
0x1496   : > { %v1766_v22 = vsub.f32 %v1761_v24, %v1765_v29 }
0x1498   : > { %v1767_v30 = vmul.f32 %v1766_v22, %v1766_v22 }
0x149a   : > { %v1768_v32 = vsel %vm484_vm0, %v1767_v30, 0.0 }
0x149b   : > { %1769 = vadd.xlane.f32.xlu1 %v1768_v32 }
0x1524   : > { %v1770_v35 = vpop.xlane.xlu1 %1769 }
0x1525   : > { %v1771_v36 = vmul.f32 0.03125, %v1770_v35 }
0x1527   : > { %v1772_v45 = vadd.f32 1e-12, %v1771_v36 }
0x1529   : > { %2372 = vrsqrt.f32 %v1772_v45 }
0x1536   : > { %v2373_v37 = vpop.eup %2372 }
0x1537   : > { %v1774_v38 = vmul.f32 %v2373_v37, %v1766_v22 }
0x1539   : > { %v1779_v41 = vmul.f32 %v1778_v47, %v1774_v38 }
0x153b   : > { %v1784_v42 = vadd.f32 %v1783_v39, %v1779_v41 }
0x153d   : > { %v1785_v43 = vpack.c.bf16 %v1784_v42, %v1784_v42 }
0x153f   : > { %2275 = vmatmul.mubr.msk.bf16.vlgmr.msra.gmra.mxu1 %vm484_vm0, %v1785_v43 }
0x1540   : > { %2282 = vmatprep.mubr.msk.bf16.mxu1 %vm2385_vm1, %v2384_v8  ;;  %2279 = vmatpush3.bf16.msra.mxu1 %v2326_v54 }
0x1541   : > { %2280 = vmatprep.subr.bf16.mxu1 %v2384_v8  ;;  %v1852_v8 = vld [vmem:[%s2865_s13] sm:$0x1] }
0x1544   : > { %2281 = vmatpush3.bf16.msra.mxu1 %v2327_v34 }
0x15ff   : > { %v1840_v2 = vpop.f32.mrf.mxu1 }
0x1600   : > { %v1841_v31 = vadd.f32 %v1840_v2, %v1790_v1 }
0x1601   : > { %v2276_v50 = vpop.f32.mrf.mxu1 }
0x1602   : > { %2374 = vtanh.f32 %v1841_v31 }
0x1603   : > { %v1843_v7 = vpop.f32.mrf.mxu1 }
0x1605   : > { %v2277_v44 = vpop.f32.mrf.mxu1 }
0x160f   : > { %v2375_v46 = vpop.eup %2374 }
0x1610   : > { %v1847_v48 = vpack.c.bf16 %v2375_v46, %v2375_v46 }
0x1612   : > { %2283 = vmatmul.mubr.msk.bf16.vlgmr.msra.gmra.mxu1 %vm484_vm0, %v1847_v48 }
0x16d2   : > { %v1902_v49 = vpop.f32.mrf.mxu1 }
0x16d3   : > { %v1903_v51 = vadd.f32 %v1902_v49, %v1852_v8 }
0x16d4   : > { %v2284_v55 = vpop.f32.mrf.mxu1 }
0x16d5   : > { %v1911_v56 = vrot.slane %v1903_v51, %v2608_v52 }
0x16d6   : > { %v1905_v57 = vpop.f32.mrf.mxu1 }
0x16d7   : > { %1912 = vst [vmem:[%s479_s28] sm:$0xff] %v1911_v56 }
0x16d8   : > { %v2285_v58 = vpop.f32.mrf.mxu1 }
0x16d9 PF: > { %s24_s29 = sadd.s32 1, %s2382_s29  }
0x16da   : > { %p21_p4 = scmp.ge.s32.totalorder %s24_s29, 4  }
0x16dc   :  { %23 = sbr.rel (!%p21_p4) target bundleno = 1 (0x1), region = 116 }

</bundles_post_ra>
